<compile_context>
chip_gen: v7x
topology: tpu7x:2x2x1
jax: 0.10.0
libtpu: 0.0.40
codegen_flags: <defaults>
</compile_context>

<pallas_src>
import jax
import jax.numpy as jnp
from jax import lax
from jax.experimental import pallas as pl
from jax.experimental.pallas import tpu as pltpu


# ----------------------------- Pallas kernel --------------------------------


def _down_fused_kernel(x_ref, w1_ref, s1_ref, w2_ref, s2_ref, o_ref):
    """Fused MaxPool2d(2) -> (Conv3x3 + BN + ReLU) x 2 for NB images.

    x_ref : (NB, H, Wo, 2*Cin) bf16  NHWC input with adjacent W columns folded
                                     into channels (so the 2x2 pool needs no
                                     strided slicing)
    w1_ref: (9*Cin,  Cmid)     bf16  conv1 weights, BN1 scale folded in
    s1_ref: (1, Cmid)          f32   BN1 shift (beta - mean*scale)
    w2_ref: (9*Cmid, Cout)     bf16  conv2 weights, BN2 scale folded in
    s2_ref: (1, Cout)          f32   BN2 shift
    o_ref : (NB, Ho*Wo, Cout)  bf16  output (flattened spatial)
    """
    NB, H, Wo, two_cin = x_ref.shape
    Cin = two_cin // 2
    Ho = H // 2
    Cmid = w1_ref.shape[1]
    Cout = w2_ref.shape[1]

    # ----------------------- MaxPool2d(2), bf16 ------------------------------
    # W pooling via contiguous lane slices (columns 2w / 2w+1 live in the
    # low/high half of the folded channel dim); H pooling via a free
    # leading-dim split.  No strided indexing, no gathers, no scratch.
    x = x_ref[...]                                           # (NB, H, Wo, 2*Cin)
    colmax = jnp.maximum(x[..., :Cin], x[..., Cin:])         # (NB, H, Wo, Cin)
    colmax = colmax.reshape(NB, Ho, 2, Wo, Cin)              # split rows (free)
    pooled = jnp.maximum(colmax[:, :, 0], colmax[:, :, 1])   # (NB, Ho, Wo, Cin)

    # --------------- Conv3x3 (pad=1) + folded-BN shift + ReLU ----------------
    def conv3x3_bn_relu(src, w_ref, s_ref):
        nb, h, w, c = src.shape
        # padding=1 built in registers (no VMEM scratch round trip):
        zc = jnp.zeros((nb, h, 1, c), src.dtype)
        xp = jnp.concatenate([zc, src, zc], axis=2)          # (nb, h, w+2, c)
        zr = jnp.zeros((nb, 1, w + 2, c), src.dtype)
        xp = jnp.concatenate([zr, xp, zr], axis=1)           # (nb, h+2, w+2, c)
        # im2col: 9 taps concatenated along K -> ONE MXU matmul, K = 9*c.
        taps = [xp[:, ky:ky + h, kx:kx + w, :]
                for ky in range(3) for kx in range(3)]
        patches = jnp.concatenate(taps, axis=-1)             # (nb, h, w, 9c) bf16
        patches = patches.reshape(nb * h * w, 9 * c)         # M = nb*h*w
        acc = jnp.dot(patches, w_ref[...],
                      preferred_element_type=jnp.float32)    # (M, cout) f32
        # BatchNorm (scale already folded into w) + ReLU.
        return jnp.maximum(acc + s_ref[...], 0.0)

    y1 = conv3x3_bn_relu(pooled, w1_ref, s1_ref)             # (M, Cmid) f32
    y1 = y1.astype(jnp.bfloat16).reshape(NB, Ho, Wo, Cmid)   # bf16 intermediate
    y2 = conv3x3_bn_relu(y1, w2_ref, s2_ref)                 # (M, Cout) f32
    o_ref[...] = y2.astype(o_ref.dtype).reshape(NB, Ho * Wo, Cout)


# ------------------------------- Wrappers ------------------------------------


def _pick_image_tile(n, ho, wo, target_m=256):
    """Images per grid step: fill the MXU M dim (>=128/256) without remainder."""
    nb = max(1, min(n, target_m // max(1, ho * wo)))
    while n % nb:
        nb -= 1
    return nb


@jax.jit
def down_forward_nhwc(x_nhwc, params):
    """Down block, NHWC in / NHWC out (bf16).  Prefer this entry point when
    composing UNet blocks so no per-block NCHW<->NHWC HBM transposes are paid."""
    N, H, W, Cin = x_nhwc.shape
    Ho, Wo = H // 2, W // 2
    Cmid = params["w1"].shape[1]
    Cout = params["w2"].shape[1]
    NB = _pick_image_tile(N, Ho, Wo)

    x = x_nhwc.astype(jnp.bfloat16)
    # Fold adjacent W columns into channels (row-major-order-preserving, free
    # reshape) so the in-kernel 2x2 pool uses only contiguous lane slices.
    x = x.reshape(N, H, Wo, 2 * Cin)

    out = pl.pallas_call(
        _down_fused_kernel,
        out_shape=jax.ShapeDtypeStruct((N, Ho * Wo, Cout), jnp.bfloat16),
        grid=(N // NB,),
        in_specs=[
            pl.BlockSpec((NB, H, Wo, 2 * Cin), lambda n: (n, 0, 0, 0)),
            pl.BlockSpec((9 * Cin, Cmid), lambda n: (0, 0)),
            pl.BlockSpec((1, Cmid), lambda n: (0, 0)),
            pl.BlockSpec((9 * Cmid, Cout), lambda n: (0, 0)),
            pl.BlockSpec((1, Cout), lambda n: (0, 0)),
        ],
        out_specs=pl.BlockSpec((NB, Ho * Wo, Cout), lambda n: (n, 0, 0)),
        compiler_params=pltpu.CompilerParams(
            dimension_semantics=("parallel",),
            vmem_limit_bytes=32 * 1024 * 1024),
    )(x, params["w1"], params["shift1"], params["w2"], params["shift2"])

    return out.reshape(N, Ho, Wo, Cout)


@jax.jit
def down_forward(x_nchw, params):
    """PyTorch-interface wrapper: NCHW f32 in, NCHW f32 out."""
    out = down_forward_nhwc(jnp.transpose(x_nchw, (0, 2, 3, 1)), params)
    return jnp.transpose(out, (0, 3, 1, 2)).astype(jnp.float32)


# ----------------------- Deterministic parameter init ------------------------


def init_down_params(in_channels, out_channels, mid_channels=None, seed=0):
    if mid_channels is None:
        mid_channels = out_channels
    k1, k2 = jax.random.split(jax.random.PRNGKey(seed), 2)

    def conv_w(key, cin, cout):
        fan_in = cin * 9
        return jax.random.normal(key, (3, 3, cin, cout), jnp.float32) * (1.0 / fan_in) ** 0.5

    def bn(c, base):
        idx = jnp.arange(c, dtype=jnp.float32)
        gamma = 1.0 + 0.1 * idx / c
        beta = 0.01 * (idx - base)
        mean = 0.02 * idx
        var = 1.0 + 0.05 * idx / c
        eps = 1e-5
        scale = gamma / jnp.sqrt(var + eps)
        shift = beta - mean * scale
        return scale, shift

    w1 = conv_w(k1, in_channels, mid_channels)
    s1, b1 = bn(mid_channels, 0.5)
    w2 = conv_w(k2, mid_channels, out_channels)
    s2, b2 = bn(out_channels, 1.0)

    # One-time host-side fold of the BN scale into the conv weights; bf16 for
    # the MXU (accumulation stays f32 inside the kernel).
    w1f = (w1 * s1[None, None, None, :]).astype(jnp.bfloat16)   # HWIO
    w2f = (w2 * s2[None, None, None, :]).astype(jnp.bfloat16)   # HWIO
    return dict(
        # HWIO folded weights, for the pure-JAX reference.
        w1_hwio=w1f, w2_hwio=w2f,
        # K-major (9*Cin, Cout) weights consumed by the Pallas kernel
        # (tap order ky-major, kx, cin — matches the kernel's im2col concat).
        w1=w1f.reshape(9 * in_channels, mid_channels),
        w2=w2f.reshape(9 * mid_channels, out_channels),
        shift1=b1.reshape(1, mid_channels).astype(jnp.float32),
        shift2=b2.reshape(1, out_channels).astype(jnp.float32),
    )


# ------------------------------ Reference ------------------------------------


def down_reference(x_nchw, params):
    # Pure-JAX (XLA) reference using the same bf16 folded weights / bf16
    # activations and f32 accumulation, so it matches the kernel arithmetic.
    x = jnp.transpose(x_nchw, (0, 2, 3, 1)).astype(jnp.bfloat16)
    N, H, W, C = x.shape
    x = jnp.max(x.reshape(N, H // 2, 2, W // 2, 2, C), axis=(2, 4))

    def cbr(x, w_hwio, shift):
        y = lax.conv_general_dilated(
            x, w_hwio, window_strides=(1, 1), padding="SAME",
            dimension_numbers=("NHWC", "HWIO", "NHWC"),
            preferred_element_type=jnp.float32)
        return jnp.maximum(y + shift, 0.0)

    h = cbr(x, params["w1_hwio"], params["shift1"]).astype(jnp.bfloat16)
    y = cbr(h, params["w2_hwio"], params["shift2"])
    return jnp.transpose(y, (0, 3, 1, 2))


# --------------------------------- Main ---------------------------------------


if __name__ == "__main__":
    N, Cin, H, W = 2, 4, 16, 16
    Cout = 8

    x = jax.random.normal(jax.random.PRNGKey(0), (N, Cin, H, W), jnp.float32)
    params = init_down_params(Cin, Cout, seed=0)

    out = jax.block_until_ready(down_forward(x, params))
    assert out.shape == (N, Cout, H // 2, W // 2), out.shape

    ref = jax.block_until_ready(down_reference(x, params))
    err = float(jnp.max(jnp.abs(out - ref)))
    # Kernel output is bf16 (halved HBM writeback); allow bf16 rounding slack.
    assert err < 3e-2, err

    print("KERNEL_OK")
</pallas_src>

<mosaic_0001>
module attributes {stable_mosaic.version = 11 : i64} {
  func.func @_down_fused_kernel(%arg0: i32, %arg1: memref<2x16x8x8xbf16, #tpu.memory_space<vmem>>, %arg2: memref<36x8xbf16, #tpu.memory_space<vmem>>, %arg3: memref<1x8xf32, #tpu.memory_space<vmem>>, %arg4: memref<72x8xbf16, #tpu.memory_space<vmem>>, %arg5: memref<1x8xf32, #tpu.memory_space<vmem>>, %arg6: memref<2x64x8xbf16, #tpu.memory_space<vmem>>) attributes {dimension_semantics = [#tpu.dimension_semantics<parallel>], iteration_bounds = array<i64: 1>, scalar_prefetch = 0 : i64, scratch_operands = 0 : i64, tpu.core_type = #tpu.core_type<tc>, window_params = [{transform_indices = @transform_0, window_bounds = array<i64: 2, 16, 8, 8>}, {pipeline_mode = #tpu.pipeline_mode<synchronous>, transform_indices = @transform_1, window_bounds = array<i64: 36, 8>}, {pipeline_mode = #tpu.pipeline_mode<synchronous>, transform_indices = @transform_2, window_bounds = array<i64: 1, 8>}, {pipeline_mode = #tpu.pipeline_mode<synchronous>, transform_indices = @transform_3, window_bounds = array<i64: 72, 8>}, {pipeline_mode = #tpu.pipeline_mode<synchronous>, transform_indices = @transform_4, window_bounds = array<i64: 1, 8>}, {transform_indices = @transform_5, window_bounds = array<i64: 2, 64, 8>}]} {
    %c0 = arith.constant 0 : index
    %c0_0 = arith.constant 0 : index
    %c0_1 = arith.constant 0 : index
    %c0_2 = arith.constant 0 : index
    %0 = vector.load %arg1[%c0, %c0_0, %c0_1, %c0_2] : memref<2x16x8x8xbf16, #tpu.memory_space<vmem>>, vector<2x16x8x8xbf16>
    %1 = vector.extract_strided_slice %0 {offsets = [0, 0, 0, 0], sizes = [2, 16, 8, 4], strides = [1, 1, 1, 1]} : vector<2x16x8x8xbf16> to vector<2x16x8x4xbf16>
    %2 = vector.extract_strided_slice %0 {offsets = [0, 0, 0, 4], sizes = [2, 16, 8, 4], strides = [1, 1, 1, 1]} : vector<2x16x8x8xbf16> to vector<2x16x8x4xbf16>
    %3 = arith.maximumf %1, %2 : vector<2x16x8x4xbf16>
    %4 = vector.shape_cast %3 : vector<2x16x8x4xbf16> to vector<2x8x2x8x4xbf16>
    %5 = vector.extract_strided_slice %4 {offsets = [0, 0, 0, 0, 0], sizes = [2, 8, 1, 8, 4], strides = [1, 1, 1, 1, 1]} : vector<2x8x2x8x4xbf16> to vector<2x8x1x8x4xbf16>
    %6 = vector.shape_cast %5 : vector<2x8x1x8x4xbf16> to vector<2x8x8x4xbf16>
    %7 = vector.extract_strided_slice %4 {offsets = [0, 0, 1, 0, 0], sizes = [2, 8, 1, 8, 4], strides = [1, 1, 1, 1, 1]} : vector<2x8x2x8x4xbf16> to vector<2x8x1x8x4xbf16>
    %8 = vector.shape_cast %7 : vector<2x8x1x8x4xbf16> to vector<2x8x8x4xbf16>
    %9 = arith.maximumf %6, %8 : vector<2x8x8x4xbf16>
    %cst = arith.constant 0.000000e+00 : bf16
    %10 = vector.broadcast %cst : bf16 to vector<2x8x1x4xbf16>
    %11 = tpu.concatenate %10, %9, %10 in 2 : vector<2x8x1x4xbf16>, vector<2x8x8x4xbf16>, vector<2x8x1x4xbf16> -> vector<2x8x10x4xbf16>
    %cst_3 = arith.constant 0.000000e+00 : bf16
    %12 = vector.broadcast %cst_3 : bf16 to vector<2x1x10x4xbf16>
    %13 = tpu.concatenate %12, %11, %12 in 1 : vector<2x1x10x4xbf16>, vector<2x8x10x4xbf16>, vector<2x1x10x4xbf16> -> vector<2x10x10x4xbf16>
    %14 = vector.extract_strided_slice %13 {offsets = [0, 0, 0, 0], sizes = [2, 8, 8, 4], strides = [1, 1, 1, 1]} : vector<2x10x10x4xbf16> to vector<2x8x8x4xbf16>
    %15 = vector.extract_strided_slice %13 {offsets = [0, 0, 1, 0], sizes = [2, 8, 8, 4], strides = [1, 1, 1, 1]} : vector<2x10x10x4xbf16> to vector<2x8x8x4xbf16>
    %16 = vector.extract_strided_slice %13 {offsets = [0, 0, 2, 0], sizes = [2, 8, 8, 4], strides = [1, 1, 1, 1]} : vector<2x10x10x4xbf16> to vector<2x8x8x4xbf16>
    %17 = vector.extract_strided_slice %13 {offsets = [0, 1, 0, 0], sizes = [2, 8, 8, 4], strides = [1, 1, 1, 1]} : vector<2x10x10x4xbf16> to vector<2x8x8x4xbf16>
    %18 = vector.extract_strided_slice %13 {offsets = [0, 1, 1, 0], sizes = [2, 8, 8, 4], strides = [1, 1, 1, 1]} : vector<2x10x10x4xbf16> to vector<2x8x8x4xbf16>
    %19 = vector.extract_strided_slice %13 {offsets = [0, 1, 2, 0], sizes = [2, 8, 8, 4], strides = [1, 1, 1, 1]} : vector<2x10x10x4xbf16> to vector<2x8x8x4xbf16>
    %20 = vector.extract_strided_slice %13 {offsets = [0, 2, 0, 0], sizes = [2, 8, 8, 4], strides = [1, 1, 1, 1]} : vector<2x10x10x4xbf16> to vector<2x8x8x4xbf16>
    %21 = vector.extract_strided_slice %13 {offsets = [0, 2, 1, 0], sizes = [2, 8, 8, 4], strides = [1, 1, 1, 1]} : vector<2x10x10x4xbf16> to vector<2x8x8x4xbf16>
    %22 = vector.extract_strided_slice %13 {offsets = [0, 2, 2, 0], sizes = [2, 8, 8, 4], strides = [1, 1, 1, 1]} : vector<2x10x10x4xbf16> to vector<2x8x8x4xbf16>
    %23 = tpu.concatenate %14, %15, %16, %17, %18, %19, %20, %21, %22 in 3 : vector<2x8x8x4xbf16>, vector<2x8x8x4xbf16>, vector<2x8x8x4xbf16>, vector<2x8x8x4xbf16>, vector<2x8x8x4xbf16>, vector<2x8x8x4xbf16>, vector<2x8x8x4xbf16>, vector<2x8x8x4xbf16>, vector<2x8x8x4xbf16> -> vector<2x8x8x36xbf16>
    %24 = vector.shape_cast %23 : vector<2x8x8x36xbf16> to vector<128x36xbf16>
    %c0_4 = arith.constant 0 : index
    %c0_5 = arith.constant 0 : index
    %25 = vector.load %arg2[%c0_4, %c0_5] : memref<36x8xbf16, #tpu.memory_space<vmem>>, vector<36x8xbf16>
    %cst_6 = arith.constant dense<0.000000e+00> : vector<128x8xf32>
    %26 = tpu.matmul %24, %25, %cst_6 {dimension_numbers = #tpu.dot_dimension_numbers<[1], [0], [0], [1], [0, 0, 1, 1], [], []>} : vector<128x36xbf16>, vector<36x8xbf16>, vector<128x8xf32> -> vector<128x8xf32>
    %c0_7 = arith.constant 0 : index
    %c0_8 = arith.constant 0 : index
    %27 = vector.load %arg3[%c0_7, %c0_8] : memref<1x8xf32, #tpu.memory_space<vmem>>, vector<1x8xf32>
    %28 = vector.broadcast %27 : vector<1x8xf32> to vector<128x8xf32>
    %29 = arith.addf %26, %28 : vector<128x8xf32>
    %cst_9 = arith.constant 0.000000e+00 : f32
    %30 = vector.broadcast %cst_9 : f32 to vector<128x8xf32>
    %31 = arith.maximumf %29, %30 : vector<128x8xf32>
    %32 = arith.truncf %31 : vector<128x8xf32> to vector<128x8xbf16>
    %33 = vector.shape_cast %32 : vector<128x8xbf16> to vector<2x8x8x8xbf16>
    %cst_10 = arith.constant 0.000000e+00 : bf16
    %34 = vector.broadcast %cst_10 : bf16 to vector<2x8x1x8xbf16>
    %35 = tpu.concatenate %34, %33, %34 in 2 : vector<2x8x1x8xbf16>, vector<2x8x8x8xbf16>, vector<2x8x1x8xbf16> -> vector<2x8x10x8xbf16>
    %cst_11 = arith.constant 0.000000e+00 : bf16
    %36 = vector.broadcast %cst_11 : bf16 to vector<2x1x10x8xbf16>
    %37 = tpu.concatenate %36, %35, %36 in 1 : vector<2x1x10x8xbf16>, vector<2x8x10x8xbf16>, vector<2x1x10x8xbf16> -> vector<2x10x10x8xbf16>
    %38 = vector.extract_strided_slice %37 {offsets = [0, 0, 0, 0], sizes = [2, 8, 8, 8], strides = [1, 1, 1, 1]} : vector<2x10x10x8xbf16> to vector<2x8x8x8xbf16>
    %39 = vector.extract_strided_slice %37 {offsets = [0, 0, 1, 0], sizes = [2, 8, 8, 8], strides = [1, 1, 1, 1]} : vector<2x10x10x8xbf16> to vector<2x8x8x8xbf16>
    %40 = vector.extract_strided_slice %37 {offsets = [0, 0, 2, 0], sizes = [2, 8, 8, 8], strides = [1, 1, 1, 1]} : vector<2x10x10x8xbf16> to vector<2x8x8x8xbf16>
    %41 = vector.extract_strided_slice %37 {offsets = [0, 1, 0, 0], sizes = [2, 8, 8, 8], strides = [1, 1, 1, 1]} : vector<2x10x10x8xbf16> to vector<2x8x8x8xbf16>
    %42 = vector.extract_strided_slice %37 {offsets = [0, 1, 1, 0], sizes = [2, 8, 8, 8], strides = [1, 1, 1, 1]} : vector<2x10x10x8xbf16> to vector<2x8x8x8xbf16>
    %43 = vector.extract_strided_slice %37 {offsets = [0, 1, 2, 0], sizes = [2, 8, 8, 8], strides = [1, 1, 1, 1]} : vector<2x10x10x8xbf16> to vector<2x8x8x8xbf16>
    %44 = vector.extract_strided_slice %37 {offsets = [0, 2, 0, 0], sizes = [2, 8, 8, 8], strides = [1, 1, 1, 1]} : vector<2x10x10x8xbf16> to vector<2x8x8x8xbf16>
    %45 = vector.extract_strided_slice %37 {offsets = [0, 2, 1, 0], sizes = [2, 8, 8, 8], strides = [1, 1, 1, 1]} : vector<2x10x10x8xbf16> to vector<2x8x8x8xbf16>
    %46 = vector.extract_strided_slice %37 {offsets = [0, 2, 2, 0], sizes = [2, 8, 8, 8], strides = [1, 1, 1, 1]} : vector<2x10x10x8xbf16> to vector<2x8x8x8xbf16>
    %47 = tpu.concatenate %38, %39, %40, %41, %42, %43, %44, %45, %46 in 3 : vector<2x8x8x8xbf16>, vector<2x8x8x8xbf16>, vector<2x8x8x8xbf16>, vector<2x8x8x8xbf16>, vector<2x8x8x8xbf16>, vector<2x8x8x8xbf16>, vector<2x8x8x8xbf16>, vector<2x8x8x8xbf16>, vector<2x8x8x8xbf16> -> vector<2x8x8x72xbf16>
    %48 = vector.shape_cast %47 : vector<2x8x8x72xbf16> to vector<128x72xbf16>
    %c0_12 = arith.constant 0 : index
    %c0_13 = arith.constant 0 : index
    %49 = vector.load %arg4[%c0_12, %c0_13] : memref<72x8xbf16, #tpu.memory_space<vmem>>, vector<72x8xbf16>
    %cst_14 = arith.constant dense<0.000000e+00> : vector<128x8xf32>
    %50 = tpu.matmul %48, %49, %cst_14 {dimension_numbers = #tpu.dot_dimension_numbers<[1], [0], [0], [1], [0, 0, 1, 1], [], []>} : vector<128x72xbf16>, vector<72x8xbf16>, vector<128x8xf32> -> vector<128x8xf32>
    %c0_15 = arith.constant 0 : index
    %c0_16 = arith.constant 0 : index
    %51 = vector.load %arg5[%c0_15, %c0_16] : memref<1x8xf32, #tpu.memory_space<vmem>>, vector<1x8xf32>
    %52 = vector.broadcast %51 : vector<1x8xf32> to vector<128x8xf32>
    %53 = arith.addf %50, %52 : vector<128x8xf32>
    %cst_17 = arith.constant 0.000000e+00 : f32
    %54 = vector.broadcast %cst_17 : f32 to vector<128x8xf32>
    %55 = arith.maximumf %53, %54 : vector<128x8xf32>
    %56 = arith.truncf %55 : vector<128x8xf32> to vector<128x8xbf16>
    %57 = vector.shape_cast %56 : vector<128x8xbf16> to vector<2x64x8xbf16>
    %c0_18 = arith.constant 0 : index
    %c0_19 = arith.constant 0 : index
    %c0_20 = arith.constant 0 : index
    %58 = vector.load %arg6[%c0_18, %c0_19, %c0_20] : memref<2x64x8xbf16, #tpu.memory_space<vmem>>, vector<2x64x8xbf16>
    tpu.vector_store %arg6[%c0_18, %c0_19, %c0_20], %57 {strides = array<i32>} : memref<2x64x8xbf16, #tpu.memory_space<vmem>>, vector<2x64x8xbf16>,
    return
  }
  func.func @transform_0(%arg0: i32) -> (i32, i32, i32, i32) {
    %c0_i32 = arith.constant 0 : i32
    %c0_i32_0 = arith.constant 0 : i32
    %c0_i32_1 = arith.constant 0 : i32
    %c0_i32_2 = arith.constant 0 : i32
    return %arg0, %c0_i32, %c0_i32_0, %c0_i32_1 : i32, i32, i32, i32
  }
  func.func @transform_1(%arg0: i32) -> (i32, i32) {
    %c0_i32 = arith.constant 0 : i32
    %c0_i32_0 = arith.constant 0 : i32
    %c0_i32_1 = arith.constant 0 : i32
    return %c0_i32, %c0_i32_0 : i32, i32
  }
  func.func @transform_2(%arg0: i32) -> (i32, i32) {
    %c0_i32 = arith.constant 0 : i32
    %c0_i32_0 = arith.constant 0 : i32
    %c0_i32_1 = arith.constant 0 : i32
    return %c0_i32, %c0_i32_0 : i32, i32
  }
  func.func @transform_3(%arg0: i32) -> (i32, i32) {
    %c0_i32 = arith.constant 0 : i32
    %c0_i32_0 = arith.constant 0 : i32
    %c0_i32_1 = arith.constant 0 : i32
    return %c0_i32, %c0_i32_0 : i32, i32
  }
  func.func @transform_4(%arg0: i32) -> (i32, i32) {
    %c0_i32 = arith.constant 0 : i32
    %c0_i32_0 = arith.constant 0 : i32
    %c0_i32_1 = arith.constant 0 : i32
    return %c0_i32, %c0_i32_0 : i32, i32
  }
  func.func @transform_5(%arg0: i32) -> (i32, i32, i32) {
    %c0_i32 = arith.constant 0 : i32
    %c0_i32_0 = arith.constant 0 : i32
    %c0_i32_1 = arith.constant 0 : i32
    return %arg0, %c0_i32, %c0_i32_0 : i32, i32, i32
  }
}

</mosaic_0001>

<bundles_post_ra>
// kernel: down_forward_nhwc.1
= control target key start
LH: loop header
LB: loop body
LE: loop exit
PB: predicated region body
PF: predicated region fallthrough
CT: control target
= control target key end

     0   :  { %s2725_s22 = smov 124   ;;  %s4428_s0 = inlined_call_operand.vmem [shape: bf16[2,16,8,8], index: 0, kind: input, shape index: {}]   ;;  %s4429_s1 = inlined_call_operand.vmem [shape: bf16[36,8], index: 1, kind: input, shape index: {}]   ;;  %s4430_s2 = inlined_call_operand.vmem [shape: f32[1,8], index: 2, kind: input, shape index: {}]   ;;  %s4431_s3 = inlined_call_operand.vmem [shape: bf16[72,8], index: 3, kind: input, shape index: {}]   ;;  %s4432_s4 = inlined_call_operand.vmem [shape: f32[1,8], index: 4, kind: input, shape index: {}]   ;;  %s4433_s5 = inlined_call_operand.hbm [shape: bf16[2,64,8], index: 5, kind: output, shape index: {}]  }
   0x1   :  { %v2773_v0 = vld [vmem:[%s4428_s0 + $0x8] sm:$0xf]  ;;  %v2778_v1 = vld [vmem:[%s4428_s0] sm:$0xf]  ;;  %v2787_v2 = vld [vmem:[%s4428_s0 + $0xc] sm:$0xf] }
   0x2   :  { %90 = vrot.lane.b32.xlu1 %v2773_v0, %s2725_s22  ;;  %86 = vrot.lane.b32.xlu0 %v2778_v1, %s2725_s22  ;;  %v2792_v3 = vld [vmem:[%s4428_s0 + $0x4] sm:$0xf]  ;;  %v2801_v4 = vld [vmem:[%s4428_s0 + $0x14] sm:$0xf] }
   0x3   :  { %v2806_v5 = vld [vmem:[%s4428_s0 + $0x10] sm:$0xf]  ;;  %v2815_v6 = vld [vmem:[%s4428_s0 + $0x1c] sm:$0xf]  ;;  %v2820_v7 = vld [vmem:[%s4428_s0 + $0x18] sm:$0xf] }
   0x4   :  { %v2825_v8 = vld [vmem:[%s4428_s0 + $0x24] sm:$0xf]  ;;  %v2834_v9 = vld [vmem:[%s4428_s0 + $0x20] sm:$0xf]  ;;  %v2839_v10 = vld [vmem:[%s4428_s0 + $0x2c] sm:$0xf] }
   0x5   :  { %v2848_v11 = vld [vmem:[%s4428_s0 + $0x28] sm:$0xf] }
   0x6   :  { %92 = vrot.lane.b32.xlu1 %v2787_v2, %s2725_s22  ;;  %88 = vrot.lane.b32.xlu0 %v2792_v3, %s2725_s22 }
   0xa   :  { %96 = vrot.lane.b32.xlu1 %v2801_v4, %s2725_s22  ;;  %94 = vrot.lane.b32.xlu0 %v2806_v5, %s2725_s22 }
   0xe   :  { %100 = vrot.lane.b32.xlu1 %v2815_v6, %s2725_s22  ;;  %98 = vrot.lane.b32.xlu0 %v2820_v7, %s2725_s22 }
  0x12   :  { %104 = vrot.lane.b32.xlu1 %v2825_v8, %s2725_s22  ;;  %102 = vrot.lane.b32.xlu0 %v2834_v9, %s2725_s22 }
  0x13   :  { %10 = vsyncpa [#allocation3], 0  ;;  %v2857_v12 = vld [vmem:[%s4428_s0 + $0x34] sm:$0xf]  ;;  %v2862_v13 = vld [vmem:[%s4428_s0 + $0x30] sm:$0xf] }
  0x14   :  { %v2871_v14 = vld [vmem:[%s4428_s0 + $0x3c] sm:$0xf]  ;;  %v2876_v15 = vld [vmem:[%s4428_s0 + $0x38] sm:$0xf]  ;;  %v2885_v16 = vld [vmem:[%s4428_s0 + $0x40] sm:$0xf] }
  0x15   :  { %v2890_v17 = vld [vmem:[%s4428_s0 + $0x44] sm:$0xf]  ;;  %v2899_v18 = vld [vmem:[%s4428_s0 + $0x48] sm:$0xf]  ;;  %v2904_v19 = vld [vmem:[%s4428_s0 + $0x4c] sm:$0xf] }
  0x16   :  { %108 = vrot.lane.b32.xlu1 %v2839_v10, %s2725_s22  ;;  %106 = vrot.lane.b32.xlu0 %v2848_v11, %s2725_s22  ;;  %v2913_v20 = vld [vmem:[%s4428_s0 + $0x50] sm:$0xf]  ;;  %v2918_v21 = vld [vmem:[%s4428_s0 + $0x54] sm:$0xf]  ;;  %v2726_v32 = vmov 0   ;;  %s2727_s10 = smov 4  }
  0x17   :  { %v2927_v22 = vld [vmem:[%s4428_s0 + $0x58] sm:$0xf]  ;;  %v2932_v23 = vld [vmem:[%s4428_s0 + $0x5c] sm:$0xf]  ;;  %v2941_v24 = vld [vmem:[%s4428_s0 + $0x60] sm:$0xf] }
  0x18   :  { %v2946_v25 = vld [vmem:[%s4428_s0 + $0x64] sm:$0xf]  ;;  %v2955_v26 = vld [vmem:[%s4428_s0 + $0x68] sm:$0xf]  ;;  %v2960_v27 = vld [vmem:[%s4428_s0 + $0x6c] sm:$0xf] }
  0x19   :  { %v2969_v28 = vld [vmem:[%s4428_s0 + $0x70] sm:$0xf]  ;;  %v2974_v29 = vld [vmem:[%s4428_s0 + $0x74] sm:$0xf]  ;;  %v2983_v30 = vld [vmem:[%s4428_s0 + $0x78] sm:$0xf] }
  0x1a   :  { %112 = vrot.lane.b32.xlu1 %v2857_v12, %s2725_s22  ;;  %110 = vrot.lane.b32.xlu0 %v2862_v13, %s2725_s22  ;;  %v2988_v31 = vld [vmem:[%s4428_s0 + $0x7c] sm:$0xf]  ;;  %v2993_v33 = vrot.slane %v2726_v32, 1  ;;  %s2728_s11 = smov 8   ;;  %vm406_vm0 = vcmask 1040384   ;;  %vm425_vm2 = vcmask 1044480  }
  0x1b   :  { %vm407_vm1 = vsmask.f32 256  ;;  %vm426_vm3 = vsmask.f32 4352  ;;  %s2729_s0 = smov 12   ;;  %s2731_s12 = smov 20  }
  0x1c   :  { %vm3010_vm4 = vmand %vm406_vm0, %vm407_vm1  ;;  %s2732_s13 = smov 32   ;;  %s2733_s14 = smov 16   ;;  %vm1192_vm6 = vcmask 1041408   ;;  %vm843_vm7 = vcmask 31744   ;;  %vm874_vm8 = vcmask 64512   ;;  %vm905_vm9 = vcmask 97280  }
  0x1d   :  { %vm3015_vm5 = vmand %vm425_vm2, %vm426_vm3  ;;  %s2734_s19 = smov 28   ;;  %vm938_vm10 = vcmask 130048   ;;  %vm971_vm11 = vcmask 162816   ;;  %vm1004_vm12 = vcmask 195584   ;;  %vm1036_vm13 = vcmask 228352   ;;  %s2736_s23 = smov 64  }
  0x1e   :  { %116 = vrot.lane.b32.xlu1 %v2871_v14, %s2725_s22  ;;  %114 = vrot.lane.b32.xlu0 %v2876_v15, %s2725_s22  ;;  %vm1068_vm14 = vcmask 261120   ;;  %vm1167_vm15 = vcmask 293888   ;;  %s2737_s24 = smov 56   ;;  %vm2268_vm0 = vcmask 1043456   ;;  %vm2031_vm1 = vcmask 326656  }
  0x1f   :  { %vm2064_vm2 = vcmask 392192   ;;  %vm2096_vm3 = vcmask 457728  }
  0x22   :  { %118 = vrot.lane.b32.xlu0 %v2885_v16, %s2725_s22  ;;  %120 = vrot.lane.b32.xlu1 %v2890_v17, %s2725_s22 }
  0x26   :  { %122 = vrot.lane.b32.xlu0 %v2899_v18, %s2725_s22  ;;  %124 = vrot.lane.b32.xlu1 %v2904_v19, %s2725_s22 }
  0x2a   :  { %126 = vrot.lane.b32.xlu0 %v2913_v20, %s2725_s22  ;;  %128 = vrot.lane.b32.xlu1 %v2918_v21, %s2725_s22 }
  0x2e   :  { %130 = vrot.lane.b32.xlu0 %v2927_v22, %s2725_s22  ;;  %132 = vrot.lane.b32.xlu1 %v2932_v23, %s2725_s22 }
  0x32   :  { %134 = vrot.lane.b32.xlu0 %v2941_v24, %s2725_s22  ;;  %136 = vrot.lane.b32.xlu1 %v2946_v25, %s2725_s22 }
  0x36   :  { %138 = vrot.lane.b32.xlu0 %v2955_v26, %s2725_s22  ;;  %140 = vrot.lane.b32.xlu1 %v2960_v27, %s2725_s22 }
  0x3a   :  { %142 = vrot.lane.b32.xlu0 %v2969_v28, %s2725_s22  ;;  %144 = vrot.lane.b32.xlu1 %v2974_v29, %s2725_s22 }
  0x3e   :  { %146 = vrot.lane.b32.xlu0 %v2983_v30, %s2725_s22  ;;  %148 = vrot.lane.b32.xlu1 %v2988_v31, %s2725_s22  ;;  %s2730_s22 = smov 24  }
  0x42   :  { %549 = vrot.lane.b32.xlu0 %v2993_v33, %s2727_s10 }
  0x46   :  { %609 = vrot.lane.b32.xlu0 %v2993_v33, %s2728_s11 }
  0x74   :  { %v91_v34 = vpop.permute.xlu1 %90  ;;  %v87_v35 = vpop.permute.xlu0 %86 }
  0x75   :  { %v184_v38 = vmax.bf16 %v91_v34, %v2773_v0  ;;  %v182_v39 = vmax.bf16 %v87_v35, %v2778_v1 }
  0x78   :  { %v93_v36 = vpop.permute.xlu1 %92  ;;  %v89_v37 = vpop.permute.xlu0 %88 }
  0x79   :  { %v185_v40 = vmax.bf16 %v93_v36, %v2787_v2  ;;  %v183_v41 = vmax.bf16 %v89_v37, %v2792_v3 }
  0x7b   :  { %v215_v42 = vmax.bf16 %v185_v40, %v184_v38  ;;  %v214_v43 = vmax.bf16 %v183_v41, %v182_v39 }
  0x7c   :  { %v97_v44 = vpop.permute.xlu1 %96  ;;  %v95_v45 = vpop.permute.xlu0 %94 }
  0x7d   :  { %v2483_v46 = vcombine.low %v215_v42, %v215_v42  ;;  %v2482_v47 = vcombine.low %v214_v43, %v214_v43  ;;  %v187_v48 = vmax.bf16 %v97_v44, %v2801_v4  ;;  %v186_v49 = vmax.bf16 %v95_v45, %v2806_v5 }
  0x7f   :  { %v286_v50 = vshrl.u32 %v2483_v46, 16  ;;  %v279_v51 = vshrl.u32 %v2482_v47, 16  ;;  %v289_v52 = vshll.u32 %v2483_v46, 16  ;;  %v282_v53 = vshll.u32 %v2482_v47, 16 }
  0x80   :  { %v216_v54 = vmax.bf16 %v187_v48, %v186_v49  ;;  %v101_v55 = vpop.permute.xlu1 %100  ;;  %v99_v56 = vpop.permute.xlu0 %98 }
  0x81   :  { %v288_v57 = vrot.slane %v286_v50, 7  ;;  %v281_v58 = vrot.slane %v279_v51, 7  ;;  %v189_v59 = vmax.bf16 %v101_v55, %v2815_v6  ;;  %v188_v60 = vmax.bf16 %v99_v56, %v2820_v7 }
  0x82   :  { %v2484_v61 = vcombine.low %v216_v54, %v216_v54 }
  0x83   :  { %v291_v63 = vor.u32 %v289_v52, %v288_v57  ;;  %v284_v0 = vor.u32 %v282_v53, %v281_v58  ;;  %v217_v1 = vmax.bf16 %v189_v59, %v188_v60 }
  0x84   :  { %v293_v3 = vshrl.u32 %v2484_v61, 16  ;;  %v105_v4 = vpop.permute.xlu1 %104  ;;  %v103_v5 = vpop.permute.xlu0 %102  ;;  %v296_v37 = vshll.u32 %v2484_v61, 16 }
  0x85   :  { %v2485_v6 = vcombine.low %v217_v1, %v217_v1  ;;  %v191_v7 = vmax.bf16 %v105_v4, %v2825_v8  ;;  %v190_v34 = vmax.bf16 %v103_v5, %v2834_v9  ;;  %v410_v35 = vsel %vm3010_vm4, 0, %v291_v63 }
  0x86   :  { %v295_v36 = vrot.slane %v293_v3, 7  ;;  %v3025_v38 = vsel %vm3015_vm5, %v410_v35, 0  ;;  %v409_v39 = vsel %vm3010_vm4, 0, %v284_v0 }
  0x87   :  { %v300_v40 = vshrl.u32 %v2485_v6, 16  ;;  %v218_v41 = vmax.bf16 %v191_v7, %v190_v34  ;;  %643 = vrot.lane.b32.xlu1 %v3025_v38, %s2729_s0  ;;  %v3033_v8 = vsel %vm3015_vm5, %v409_v39, 0  ;;  %v303_v43 = vshll.u32 %v2485_v6, 16 }
  0x88   :  { %v298_v9 = vor.u32 %v296_v37, %v295_v36  ;;  %641 = vrot.lane.b32.xlu0 %v3033_v8, %s2729_s0  ;;  %v596_v55 = vrot.slane %v3025_v38, 1  ;;  %v595_v57 = vrot.slane %v3033_v8, 1  ;;  %v109_v58 = vpop.permute.xlu1 %108  ;;  %v107_v59 = vpop.permute.xlu0 %106  ;;  %v461_v3 = vshll.u32 %v3025_v38, 16 }
  0x89   :  { %v302_v42 = vrot.slane %v300_v40, 7  ;;  %v2486_v44 = vcombine.low %v218_v41, %v218_v41  ;;  %v193_v61 = vmax.bf16 %v109_v58, %v2839_v10  ;;  %v192_v63 = vmax.bf16 %v107_v59, %v2848_v11 }
  0x8a   :  { %v411_v45 = vsel %vm3010_vm4, 0, %v298_v9  ;;  %v454_v5 = vshll.u32 %v3033_v8, 16  ;;  %v463_v6 = vrot.slane %v461_v3, 1  ;;  %v459_v36 = vshrl.u32 %v3025_v38, 16 }
  0x8b   :  { %v305_v46 = vor.u32 %v303_v43, %v302_v42  ;;  %v307_v47 = vshrl.u32 %v2486_v44, 16  ;;  %v310_v48 = vshll.u32 %v2486_v44, 16  ;;  %v3041_v49 = vsel %vm3015_vm5, %v411_v45, 0 }
  0x8c   :  { %645 = vrot.lane.b32.xlu0 %v3041_v49, %s2729_s0  ;;  %v597_v60 = vrot.slane %v3041_v49, 1  ;;  %v219_v0 = vmax.bf16 %v193_v61, %v192_v63  ;;  %v113_v10 = vpop.permute.xlu1 %112  ;;  %v111_v11 = vpop.permute.xlu0 %110  ;;  %v456_v39 = vrot.slane %v454_v5, 1  ;;  %v464_v40 = vor.u32 %v463_v6, %v459_v36  ;;  %v2694_v61 = vld [vmem:[%s4429_s1 + $0x8] sm:$0xff]   ;;  %v2695_v6 = vld [vmem:[%s4429_s1 + $0x10] ss:$0 sps:$4 sm:$0x33]  }
  0x8d   :  { %v309_v50 = vrot.slane %v307_v47, 7  ;;  %v412_v51 = vsel %vm3010_vm4, 0, %v305_v46  ;;  %v195_v34 = vmax.bf16 %v113_v10, %v2857_v12  ;;  %v194_v35 = vmax.bf16 %v111_v11, %v2862_v13 }
  0x8e   :  { %v3049_v52 = vsel %vm3015_vm5, %v412_v51, 0  ;;  %v2487_v4 = vcombine.low %v219_v0, %v219_v0  ;;  %v468_v42 = vshll.u32 %v3041_v49, 16  ;;  %v452_v12 = vshrl.u32 %v3033_v8, 16 }
  0x8f   :  { %v312_v53 = vor.u32 %v310_v48, %v309_v50  ;;  %647 = vrot.lane.b32.xlu1 %v3049_v52, %s2729_s0  ;;  %v598_v1 = vrot.slane %v3049_v52, 1  ;;  %v220_v43 = vmax.bf16 %v195_v34, %v194_v35  ;;  %v466_v47 = vshrl.u32 %v3041_v49, 16 }
  0x90   :  { %753 = vrot.lane.b32.xlu0 %v3025_v38, %s2730_s22  ;;  %v314_v7 = vshrl.u32 %v2487_v4, 16  ;;  %v317_v9 = vshll.u32 %v2487_v4, 16  ;;  %v457_v44 = vor.u32 %v456_v39, %v452_v12  ;;  %v470_v45 = vrot.slane %v468_v42, 1 }
  0x91   :  { %v413_v54 = vsel %vm3010_vm4, 0, %v312_v53  ;;  %v2488_v46 = vcombine.low %v220_v43, %v220_v43  ;;  %v475_v51 = vshll.u32 %v3049_v52, 16  ;;  %v473_v63 = vshrl.u32 %v3049_v52, 16 }
  0x92   :  { %v3064_v56 = vsel %vm3015_vm5, %v413_v54, 0  ;;  %v316_v41 = vrot.slane %v314_v7, 7  ;;  %v471_v50 = vor.u32 %v470_v45, %v466_v47  ;;  %v2693_v54 = vld [vmem:[%s4429_s1] sm:$0xff]   ;;  %v1194_v36 = vsel %vm1192_vm6, %v2695_v6, 0  ;;  %s2735_s1 = smov 48  }
  0x93   :  { %755 = vrot.lane.b32.xlu1 %v3041_v49, %s2730_s22  ;;  %v3090_v37 = vrot.slane %v3064_v56, 1  ;;  %v321_v53 = vshrl.u32 %v2488_v46, 16  ;;  %2628 = vmatprep.subr.bf16.mxu0 %v2693_v54  ;;  %v477_v58 = vrot.slane %v475_v51, 1  ;;  %v482_v35 = vshll.u32 %v3064_v56, 16 }
  0x94   :  { %757 = vrot.lane.b32.xlu0 %v3049_v52, %s2730_s22  ;;  %v319_v13 = vor.u32 %v317_v9, %v316_v41  ;;  %2629 = vmatpush3.bf16.msra.mxu0 %v2693_v54  ;;  %v480_v41 = vshrl.u32 %v3064_v56, 16 }
  0x95   :  { %v323_v59 = vrot.slane %v321_v53, 7  ;;  %2630 = vmatprep.subr.bf16.mxu0 %v2694_v61  ;;  %v478_v3 = vor.u32 %v477_v58, %v473_v63  ;;  %v484_v9 = vrot.slane %v482_v35, 1 }
  0x96   :  { %v414_v48 = vsel %vm3010_vm4, 0, %v319_v13 }
  0x97   :  { %759 = vrot.lane.b32.xlu1 %v3064_v56, %s2730_s22  ;;  %v485_v12 = vor.u32 %v484_v9, %v480_v41 }
  0x98   :  { %613 = vrot.lane.b32.xlu0 %v596_v55, %s2728_s11  ;;  %2631 = vmatpush3.bf16.msra.mxu0 %v2694_v61 }
  0x99   :  { %2676 = vmatprep.subr.msk.bf16.mxu0 %vm1192_vm6, %v2695_v6  ;;  %vm2128_vm6 = vcmask 523264  }
  0x9b   :  { %611 = vrot.lane.b32.xlu1 %v595_v57, %s2728_s11 }
  0x9c   :  { %721 = vrot.lane.b32.xlu0 %v595_v57, %s2731_s12  ;;  %v3111_v57 = vsel %vm3015_vm5, %v414_v48, 0  ;;  %2633 = vmatpush3.bf16.msra.mxu0 %v1194_v36 }
  0x9d   :  { %v489_v0 = vshll.u32 %v3111_v57, 16  ;;  %v487_v7 = vshrl.u32 %v3111_v57, 16 }
  0x9f   :  { %615 = vrot.lane.b32.xlu1 %v597_v60, %s2728_s11  ;;  %v491_v34 = vrot.slane %v489_v0, 1 }
  0xa0   :  { %725 = vrot.lane.b32.xlu0 %v597_v60, %s2731_s12 }
  0xa1   :  { %v3133_v39 = vor.u32 %v491_v34, %v487_v7 }
  0xa3   :  { %723 = vrot.lane.b32.xlu1 %v596_v55, %s2731_s12 }
  0xa4   :  { %813 = vrot.lane.b32.xlu0 %v596_v55, %s2732_s13  ;;  %v115_v55 = vpop.permute.xlu0 %114 }
  0xa5   :  { %v196_v5 = vmax.bf16 %v115_v55, %v2876_v15 }
  0xa7   :  { %727 = vrot.lane.b32.xlu1 %v598_v1, %s2731_s12 }
  0xa8   :  { %817 = vrot.lane.b32.xlu0 %v598_v1, %s2732_s13  ;;  %v119_v4 = vpop.permute.xlu0 %118 }
  0xab   :  { %815 = vrot.lane.b32.xlu1 %v597_v60, %s2732_s13  ;;  %v324_v60 = vshll.u32 %v2488_v46, 16 }
  0xac   :  { %617 = vrot.lane.b32.xlu0 %v598_v1, %s2728_s11  ;;  %v117_v1 = vpop.permute.xlu1 %116 }
  0xad   :  { %v326_v10 = vor.u32 %v324_v60, %v323_v59  ;;  %v197_v11 = vmax.bf16 %v117_v1, %v2871_v14  ;;  %v198_v60 = vmax.bf16 %v119_v4, %v2885_v16 }
  0xaf   :  { %819 = vrot.lane.b32.xlu1 %v3090_v37, %s2732_s13  ;;  %v221_v14 = vmax.bf16 %v197_v11, %v196_v5  ;;  %v415_v15 = vsel %vm3010_vm4, 0, %v326_v10 }
  0xb0   :  { %553 = vrot.lane.b32.xlu0 %v464_v40, %s2727_s10  ;;  %v3138_v42 = vsel %vm3015_vm5, %v415_v15, 0 }
  0xb1   :  { %v2489_v43 = vcombine.low %v221_v14, %v221_v14  ;;  %v496_v13 = vshll.u32 %v3138_v42, 16  ;;  %v494_v47 = vshrl.u32 %v3138_v42, 16  ;;  %v3165_v63 = vrot.slane %v3138_v42, 1 }
  0xb3   :  { %619 = vrot.lane.b32.xlu1 %v3090_v37, %s2728_s11  ;;  %v328_v46 = vshrl.u32 %v2489_v43, 16  ;;  %v498_v48 = vrot.slane %v496_v13, 1  ;;  %v331_v53 = vshll.u32 %v2489_v43, 16 }
  0xb4   :  { %687 = vrot.lane.b32.xlu0 %v457_v44, %s2733_s14 }
  0xb5   :  { %v330_v51 = vrot.slane %v328_v46, 7  ;;  %v3156_v55 = vor.u32 %v498_v48, %v494_v47 }
  0xb7   :  { %551 = vrot.lane.b32.xlu1 %v457_v44, %s2727_s10  ;;  %v3145_v44 = vrot.slane %v3111_v57, 1  ;;  %v333_v58 = vor.u32 %v331_v53, %v330_v51 }
  0xb8   :  { %691 = vrot.lane.b32.xlu0 %v471_v50, %s2733_s14 }
  0xb9   :  { %v416_v1 = vsel %vm3010_vm4, 0, %v333_v58 }
  0xba   :  { %v3176_v4 = vsel %vm3015_vm5, %v416_v1, 0 }
  0xbb   :  { %555 = vrot.lane.b32.xlu1 %v471_v50, %s2727_s10  ;;  %v676_v6 = vshll.u32 %v3176_v4, 16  ;;  %v719_v51 = vrot.slane %v3176_v4, 1 }
  0xbc   :  { %783 = vrot.lane.b32.xlu0 %v464_v40, %s2734_s19 }
  0xbd   :  { %v678_v36 = vrot.slane %v676_v6, 1 }
  0xbf   :  { %689 = vrot.lane.b32.xlu1 %v464_v40, %s2733_s14  ;;  %v123_v40 = vpop.permute.xlu0 %122 }
  0xc0   :  { %787 = vrot.lane.b32.xlu0 %v478_v3, %s2734_s19 }
  0xc3   :  { %693 = vrot.lane.b32.xlu1 %v478_v3, %s2733_s14  ;;  %v127_v45 = vpop.permute.xlu0 %126 }
  0xc4   :  { %557 = vrot.lane.b32.xlu0 %v478_v3, %s2727_s10  ;;  %v202_v10 = vmax.bf16 %v127_v45, %v2913_v20  ;;  %v674_v20 = vshrl.u32 %v3176_v4, 16 }
  0xc7   :  { %785 = vrot.lane.b32.xlu1 %v471_v50, %s2734_s19  ;;  %v121_v50 = vpop.permute.xlu1 %120  ;;  %v3154_v54 = vpop.permute.xlu0 %130 }
  0xc8   :  { %561 = vrot.lane.b32.xlu0 %v3133_v39, %s2727_s10  ;;  %v199_v61 = vmax.bf16 %v121_v50, %v2890_v17 }
  0xca   :  { %v222_v3 = vmax.bf16 %v199_v61, %v198_v60 }
  0xcb   :  { %789 = vrot.lane.b32.xlu1 %v485_v12, %s2734_s19  ;;  %v125_v59 = vpop.permute.xlu1 %124  ;;  %v3167_v0 = vpop.permute.xlu0 %134 }
  0xcc   :  { %621 = vrot.lane.b32.xlu0 %v3145_v44, %s2728_s11  ;;  %v2490_v17 = vcombine.low %v222_v3, %v222_v3  ;;  %v201_v15 = vmax.bf16 %v125_v59, %v2904_v19 }
  0xce   :  { %v335_v34 = vshrl.u32 %v2490_v17, 16  ;;  %v338_v9 = vshll.u32 %v2490_v17, 16 }
  0xcf   :  { %559 = vrot.lane.b32.xlu1 %v485_v12, %s2727_s10  ;;  %v129_v16 = vpop.permute.xlu1 %128  ;;  %v3184_v5 = vpop.permute.xlu0 %138 }
  0xd0   :  { %649 = vrot.lane.b32.xlu0 %v3064_v56, %s2729_s0  ;;  %v203_v11 = vmax.bf16 %v129_v16, %v2918_v21  ;;  %v200_v21 = vmax.bf16 %v123_v40, %v2899_v18  ;;  %v337_v41 = vrot.slane %v335_v34, 7 }
  0xd2   :  { %v224_v35 = vmax.bf16 %v203_v11, %v202_v10  ;;  %v223_v13 = vmax.bf16 %v201_v15, %v200_v21  ;;  %v340_v45 = vor.u32 %v338_v9, %v337_v41  ;;  %v204_v15 = vmax.bf16 %v3154_v54, %v2927_v22 }
  0xd3   :  { %563 = vrot.lane.b32.xlu1 %v3156_v55, %s2727_s10  ;;  %v3189_v7 = vpop.permute.xlu1 %132  ;;  %v3194_v14 = vpop.permute.xlu0 %142 }
  0xd4   :  { %653 = vrot.lane.b32.xlu0 %v3138_v42, %s2729_s0  ;;  %v2492_v43 = vcombine.low %v224_v35, %v224_v35  ;;  %v2491_v19 = vcombine.low %v223_v13, %v223_v13  ;;  %v417_v47 = vsel %vm3010_vm4, 0, %v340_v45  ;;  %v205_v41 = vmax.bf16 %v3189_v7, %v2932_v23 }
  0xd5   :  { %v3222_v58 = vsel %vm3015_vm5, %v417_v47, 0 }
  0xd6   :  { %v349_v46 = vshrl.u32 %v2492_v43, 16  ;;  %v352_v50 = vshll.u32 %v2492_v43, 16  ;;  %v342_v59 = vshrl.u32 %v2491_v19, 16  ;;  %v503_v1 = vshll.u32 %v3222_v58, 16 }
  0xd7   :  { %623 = vrot.lane.b32.xlu1 %v3165_v63, %s2728_s11  ;;  %v3207_v18 = vpop.permute.xlu0 %146  ;;  %v345_v16 = vshll.u32 %v2491_v19, 16  ;;  %v501_v10 = vshrl.u32 %v3222_v58, 16  ;;  %v225_v22 = vmax.bf16 %v205_v41, %v204_v15  ;;  %v206_v15 = vmax.bf16 %v3167_v0, %v2941_v24 }
  0xd8   :  { %695 = vrot.lane.b32.xlu0 %v485_v12, %s2733_s14  ;;  %v3202_v12 = vpop.permute.xlu1 %136  ;;  %v351_v48 = vrot.slane %v349_v46, 7  ;;  %v344_v3 = vrot.slane %v342_v59, 7  ;;  %v505_v11 = vrot.slane %v503_v1, 1 }
  0xd9   :  { %v2493_v45 = vcombine.low %v225_v22, %v225_v22  ;;  %v207_v41 = vmax.bf16 %v3202_v12, %v2946_v25  ;;  %v208_v25 = vmax.bf16 %v3184_v5, %v2955_v26 }
  0xda   :  { %v354_v60 = vor.u32 %v352_v50, %v351_v48 }
  0xdb   :  { %651 = vrot.lane.b32.xlu1 %v3111_v57, %s2729_s0  ;;  %v3218_v53 = vpop.permute.xlu0 %549  ;;  %v356_v59 = vshrl.u32 %v2493_v45, 16  ;;  %v226_v24 = vmax.bf16 %v207_v41, %v206_v15 }
  0xdc   :  { %699 = vrot.lane.b32.xlu0 %v3156_v55, %s2733_s14  ;;  %v3211_v40 = vpop.permute.xlu1 %140 }
  0xdd   :  { %v209_v0 = vmax.bf16 %v3211_v40, %v2960_v27 }
  0xdf   :  { %655 = vrot.lane.b32.xlu1 %v3176_v4, %s2729_s0  ;;  %v3235_v17 = vpop.permute.xlu0 %609 }
  0xe0   :  { %729 = vrot.lane.b32.xlu0 %v3090_v37, %s2731_s12  ;;  %v679_v37 = vor.u32 %v678_v36, %v674_v20  ;;  %v3227_v61 = vpop.permute.xlu1 %144  ;;  %v506_v20 = vor.u32 %v505_v11, %v501_v10 }
  0xe1   :  { %v211_v15 = vmax.bf16 %v3227_v61, %v2974_v29 }
  0xe3   :  { %697 = vrot.lane.b32.xlu1 %v3133_v39, %s2733_s14 }
  0xe4   :  { %733 = vrot.lane.b32.xlu0 %v3165_v63, %s2731_s12  ;;  %v3242_v34 = vpop.permute.xlu1 %148 }
  0xe7   :  { %701 = vrot.lane.b32.xlu1 %v679_v37, %s2733_s14 }
  0xe8   :  { %761 = vrot.lane.b32.xlu0 %v3111_v57, %s2730_s22 }
  0xeb   :  { %731 = vrot.lane.b32.xlu1 %v3145_v44, %s2731_s12 }
  0xec   :  { %765 = vrot.lane.b32.xlu0 %v3176_v4, %s2730_s22  ;;  %v419_v4 = vsel %vm3010_vm4, 0, %v354_v60 }
  0xed   :  { %v3240_v6 = vsel %vm3015_vm5, %v419_v4, 0 }
  0xee   :  { %v517_v36 = vshll.u32 %v3240_v6, 16 }
  0xef   :  { %735 = vrot.lane.b32.xlu1 %v719_v51, %s2731_s12 }
  0xf0   :  { %791 = vrot.lane.b32.xlu0 %v3133_v39, %s2734_s19  ;;  %v347_v39 = vor.u32 %v345_v16, %v344_v3  ;;  %v519_v13 = vrot.slane %v517_v36, 1  ;;  %v358_v3 = vrot.slane %v356_v59, 7  ;;  %v359_v16 = vshll.u32 %v2493_v45, 16 }
  0xf1   :  { %v3316_v36 = vrot.slane %v3240_v6, 1 }
  0xf2   :  { %v418_v21 = vsel %vm3010_vm4, 0, %v347_v39  ;;  %v361_v11 = vor.u32 %v359_v16, %v358_v3 }
  0xf3   :  { %763 = vrot.lane.b32.xlu1 %v3138_v42, %s2730_s22  ;;  %v3264_v9 = vsel %vm3015_vm5, %v418_v21, 0 }
  0xf4   :  { %795 = vrot.lane.b32.xlu0 %v679_v37, %s2734_s19  ;;  %v515_v37 = vshrl.u32 %v3240_v6, 16  ;;  %v510_v54 = vshll.u32 %v3264_v9, 16  ;;  %v508_v19 = vshrl.u32 %v3264_v9, 16  ;;  %v3290_v50 = vrot.slane %v3264_v9, 1 }
  0xf6   :  { %v3278_v7 = vor.u32 %v519_v13, %v515_v37  ;;  %v512_v47 = vrot.slane %v510_v54, 1  ;;  %v420_v37 = vsel %vm3010_vm4, 0, %v361_v11 }
  0xf7   :  { %767 = vrot.lane.b32.xlu1 %v2726_v32, %s2730_s22  ;;  %v3335_v54 = vsel %vm3015_vm5, %v420_v37, 0 }
  0xf8   :  { %821 = vrot.lane.b32.xlu0 %v3145_v44, %s2732_s13  ;;  %v3297_v60 = vor.u32 %v512_v47, %v508_v19  ;;  %v2494_v19 = vcombine.low %v226_v24, %v226_v24  ;;  %v227_v47 = vmax.bf16 %v209_v0, %v208_v25  ;;  %v522_v27 = vshrl.u32 %v3335_v54, 16 }
  0xf9   :  { %v3260_v44 = vpop.permute.xlu1 %643  ;;  %v3381_v61 = vrot.slane %v3335_v54, 1 }
  0xfa   :  { %v3248_v35 = vpop.permute.xlu0 %641  ;;  %v363_v59 = vshrl.u32 %v2494_v19, 16  ;;  %v2495_v3 = vcombine.low %v227_v47, %v227_v47  ;;  %v366_v24 = vshll.u32 %v2494_v19, 16 }
  0xfb   :  { %793 = vrot.lane.b32.xlu1 %v3156_v55, %s2734_s19 }
  0xfc   :  { %565 = vrot.lane.b32.xlu0 %v506_v20, %s2727_s10  ;;  %v365_v37 = vrot.slane %v363_v59, 7  ;;  %v370_v25 = vshrl.u32 %v2495_v3, 16  ;;  %v373_v29 = vshll.u32 %v2495_v3, 16 }
  0xfe   :  { %v3266_v43 = vpop.permute.xlu0 %645 }
  0xff   :  { %797 = vrot.lane.b32.xlu1 %v2993_v33, %s2734_s19 }
 0x100   :  { %827 = vrot.lane.b32.xlu0 %v2993_v33, %s2732_s13 }
 0x101   :  { %v3273_v23 = vpop.permute.xlu1 %647 }
 0x102   :  { %v3276_v55 = vpop.permute.xlu0 %753 }
 0x103   :  { %823 = vrot.lane.b32.xlu1 %v3165_v63, %s2732_s13 }
 0x104   :  { %569 = vrot.lane.b32.xlu0 %v3278_v7, %s2727_s10 }
 0x105   :  { %v3284_v46 = vpop.permute.xlu1 %755 }
 0x106   :  { %v3287_v48 = vpop.permute.xlu0 %757 }
 0x107   :  { %825 = vrot.lane.b32.xlu1 %v719_v51, %s2732_s13  ;;  %v602_v51 = vrot.slane %v3222_v58, 1 }
 0x108   :  { %627 = vrot.lane.b32.xlu0 %v3290_v50, %s2728_s11 }
 0x109   :  { %v3295_v63 = vpop.permute.xlu1 %759 }
 0x10a   :  { %v3299_v1 = vpop.permute.xlu0 %613 }
 0x10b   :  { %567 = vrot.lane.b32.xlu1 %v3297_v60, %s2727_s10 }
 0x10c   :  { %657 = vrot.lane.b32.xlu0 %v3222_v58, %s2729_s0 }
 0x10d   :  { %v3305_v4 = vpop.permute.xlu1 %611 }
 0x10e   :  { %v3308_v10 = vpop.permute.xlu0 %721 }
 0x10f   :  { %625 = vrot.lane.b32.xlu1 %v602_v51, %s2728_s11 }
 0x110   :  { %661 = vrot.lane.b32.xlu0 %v3240_v6, %s2729_s0 }
 0x111   :  { %v3313_v39 = vpop.permute.xlu1 %615 }
 0x112   :  { %v3318_v21 = vpop.permute.xlu0 %725 }
 0x113   :  { %629 = vrot.lane.b32.xlu1 %v3316_v36, %s2728_s11 }
 0x114   :  { %703 = vrot.lane.b32.xlu0 %v506_v20, %s2733_s14  ;;  %v524_v20 = vshll.u32 %v3335_v54, 16 }
 0x115   :  { %v3329_v13 = vpop.permute.xlu1 %723 }
 0x116   :  { %v3331_v22 = vpop.permute.xlu0 %813  ;;  %v526_v5 = vrot.slane %v524_v20, 1 }
 0x117   :  { %659 = vrot.lane.b32.xlu1 %v3264_v9, %s2729_s0 }
 0x118   :  { %707 = vrot.lane.b32.xlu0 %v3278_v7, %s2733_s14  ;;  %v3364_v11 = vor.u32 %v526_v5, %v522_v27  ;;  %v368_v27 = vor.u32 %v366_v24, %v365_v37  ;;  %v845_v5 = vsel %vm843_vm7, 0, %v3218_v53 }
 0x119   :  { %v3345_v12 = vpop.permute.xlu1 %727  ;;  %v3395_v37 = vsel %vm874_vm8, %v845_v5, %v3235_v17 }
 0x11a   :  { %v3348_v45 = vpop.permute.xlu0 %817 }
 0x11b   :  { %663 = vrot.lane.b32.xlu1 %v3335_v54, %s2729_s0 }
 0x11c   :  { %737 = vrot.lane.b32.xlu0 %v602_v51, %s2731_s12  ;;  %v210_v51 = vmax.bf16 %v3194_v14, %v2969_v28  ;;  %v372_v28 = vrot.slane %v370_v25, 7 }
 0x11d   :  { %v3353_v26 = vpop.permute.xlu1 %815 }
 0x11e   :  { %v3356_v40 = vpop.permute.xlu0 %617  ;;  %v228_v20 = vmax.bf16 %v211_v15, %v210_v51  ;;  %v421_v51 = vsel %vm3010_vm4, 0, %v368_v27  ;;  %v375_v3 = vor.u32 %v373_v29, %v372_v28 }
 0x11f   :  { %705 = vrot.lane.b32.xlu1 %v3297_v60, %s2733_s14  ;;  %v3401_v27 = vsel %vm3015_vm5, %v421_v51, 0 }
 0x120   :  { %741 = vrot.lane.b32.xlu0 %v3316_v36, %s2731_s12  ;;  %v2496_v19 = vcombine.low %v228_v20, %v228_v20  ;;  %v422_v17 = vsel %vm3010_vm4, 0, %v375_v3  ;;  %v531_v29 = vshll.u32 %v3401_v27, 16 }
 0x121   :  { %v3362_v16 = vpop.permute.xlu1 %819 }
 0x122   :  { %v554_v41 = vpop.permute.xlu0 %553  ;;  %v377_v24 = vshrl.u32 %v2496_v19, 16  ;;  %v380_v5 = vshll.u32 %v2496_v19, 16 }
 0x123   :  { %709 = vrot.lane.b32.xlu1 %v3364_v11, %s2733_s14  ;;  %v849_v25 = vsel %vm843_vm7, %v3025_v38, %v554_v41 }
 0x124   :  { %769 = vrot.lane.b32.xlu0 %v3264_v9, %s2730_s22  ;;  %v880_v41 = vsel %vm874_vm8, %v849_v25, %v3299_v1 }
 0x125   :  { %v3374_v0 = vpop.permute.xlu1 %619  ;;  %v911_v19 = vsel %vm905_vm9, %v880_v41, %v3266_v43 }
 0x126   :  { %v688_v47 = vpop.permute.xlu0 %687 }
 0x127   :  { %739 = vrot.lane.b32.xlu1 %v3290_v50, %s2731_s12 }
 0x128   :  { %773 = vrot.lane.b32.xlu0 %v3335_v54, %s2730_s22 }
 0x129   :  { %v552_v14 = vpop.permute.xlu1 %551 }
 0x12a   :  { %v692_v59 = vpop.permute.xlu0 %691  ;;  %v847_v15 = vsel %vm843_vm7, %v3033_v8, %v552_v14  ;;  %v379_v14 = vrot.slane %v377_v24, 7 }
 0x12b   :  { %743 = vrot.lane.b32.xlu1 %v3381_v61, %s2731_s12  ;;  %v878_v8 = vsel %vm874_vm8, %v847_v15, %v3305_v4 }
 0x12c   :  { %799 = vrot.lane.b32.xlu0 %v3297_v60, %s2734_s19  ;;  %v907_v60 = vsel %vm905_vm9, %v3395_v37, %v3248_v35  ;;  %v909_v35 = vsel %vm905_vm9, %v878_v8, %v3260_v44  ;;  %v944_v44 = vsel %vm938_vm10, %v911_v19, %v692_v59  ;;  %v382_v24 = vor.u32 %v380_v5, %v379_v14 }
 0x12d   :  { %v556_v53 = vpop.permute.xlu1 %555  ;;  %v940_v4 = vsel %vm938_vm10, %v907_v60, %v688_v47 }
 0x12e   :  { %v784_v20 = vpop.permute.xlu0 %783  ;;  %v851_v38 = vsel %vm843_vm7, %v3041_v49, %v556_v53  ;;  %v3424_v49 = vsel %vm3015_vm5, %v422_v17, 0  ;;  %v973_v47 = vsel %vm971_vm11, %v940_v4, %v3308_v10  ;;  %v533_v53 = vrot.slane %v531_v29, 1 }
 0x12f   :  { %771 = vrot.lane.b32.xlu1 %v3240_v6, %s2730_s22  ;;  %v882_v3 = vsel %vm874_vm8, %v851_v38, %v3313_v39  ;;  %v529_v39 = vshrl.u32 %v3401_v27, 16  ;;  %v538_v43 = vshll.u32 %v3424_v49, 16  ;;  %v212_v17 = vmax.bf16 %v3207_v18, %v2983_v30 }
 0x130   :  { %803 = vrot.lane.b32.xlu0 %v3364_v11, %s2734_s19  ;;  %v913_v10 = vsel %vm905_vm9, %v882_v3, %v3273_v23  ;;  %v536_v41 = vshrl.u32 %v3424_v49, 16  ;;  %v423_v30 = vsel %vm3010_vm4, 0, %v382_v24 }
 0x131   :  { %v690_v28 = vpop.permute.xlu1 %689 }
 0x132   :  { %v788_v51 = vpop.permute.xlu0 %787  ;;  %v942_v1 = vsel %vm938_vm10, %v909_v35, %v690_v28 }
 0x133   :  { %775 = vrot.lane.b32.xlu1 %v3401_v27, %s2730_s22  ;;  %v975_v25 = vsel %vm971_vm11, %v942_v1, %v3329_v13  ;;  %v977_v13 = vsel %vm971_vm11, %v944_v44, %v3318_v21 }
 0x134   :  { %829 = vrot.lane.b32.xlu0 %v3290_v50, %s2732_s13  ;;  %v1006_v50 = vsel %vm1004_vm12, %v973_v47, %v3276_v55  ;;  %v213_v55 = vmax.bf16 %v3242_v34, %v2988_v31  ;;  %v1008_v60 = vsel %vm1004_vm12, %v975_v25, %v3284_v46  ;;  %v1010_v31 = vsel %vm1004_vm12, %v977_v13, %v3287_v48 }
 0x135   :  { %v694_v15 = vpop.permute.xlu1 %693  ;;  %v1038_v23 = vsel %vm1036_vm13, %v1006_v50, %v784_v20  ;;  %v1042_v4 = vsel %vm1036_vm13, %v1010_v31, %v788_v51  ;;  %v3484_v48 = vsel %vm3015_vm5, %v423_v30, 0 }
 0x136   :  { %v3443_v8 = vpop.permute.xlu0 %557  ;;  %v946_v59 = vsel %vm938_vm10, %v913_v10, %v694_v15  ;;  %v1070_v34 = vsel %vm1068_vm14, %v1038_v23, %v3331_v22  ;;  %v229_v5 = vmax.bf16 %v213_v55, %v212_v17  ;;  %v1074_v35 = vsel %vm1068_vm14, %v1042_v4, %v3348_v45 }
 0x137   :  { %801 = vrot.lane.b32.xlu1 %v3278_v7, %s2734_s19  ;;  %v534_v7 = vor.u32 %v533_v53, %v529_v39  ;;  %v979_v18 = vsel %vm971_vm11, %v946_v59, %v3345_v12  ;;  %v545_v1 = vshll.u32 %v3484_v48, 16  ;;  %v607_v39 = vrot.slane %v3424_v49, 1 }
 0x138   :  { %571 = vrot.lane.b32.xlu0 %v3364_v11, %s2727_s10  ;;  %v540_v11 = vrot.slane %v538_v43, 1  ;;  %v1012_v28 = vsel %vm1004_vm12, %v979_v18, %v3295_v63  ;;  %v2497_v19 = vcombine.low %v229_v5, %v229_v5  ;;  %v3527_v23 = vrot.slane %v3484_v48, 1 }
 0x139   :  { %v786_v38 = vpop.permute.xlu1 %785  ;;  %v547_v44 = vrot.slane %v545_v1, 1 }
 0x13a   :  { %v1040_v21 = vsel %vm1036_vm13, %v1008_v60, %v786_v38  ;;  %v3468_v20 = vpop.permute.xlu0 %561  ;;  %v384_v53 = vshrl.u32 %v2497_v19, 16  ;;  %v387_v43 = vshll.u32 %v2497_v19, 16 }
 0x13b   :  { %805 = vrot.lane.b32.xlu1 %v534_v7, %s2734_s19  ;;  %v1072_v46 = vsel %vm1068_vm14, %v1040_v21, %v3353_v26  ;;  %v3490_v26 = vor.u32 %v540_v11, %v536_v41 }
 0x13c   :  { %833 = vrot.lane.b32.xlu0 %v3381_v61, %s2732_s13  ;;  %v2499_v12 = vcombine.low %v1070_v34, %v1072_v46 }
 0x13d   :  { %v790_v29 = vpop.permute.xlu1 %789 }
 0x13e   :  { %v1044_v22 = vsel %vm1036_vm13, %v1012_v28, %v790_v29  ;;  %v3487_v14 = vpop.permute.xlu0 %621  ;;  %2634 = vmatprep.mubr.msk.bf16.mxu0 %vm1167_vm15, %v2499_v12 }
 0x13f   :  { %v1076_v63 = vsel %vm1068_vm14, %v1044_v22, %v3362_v16  ;;  %831 = vrot.lane.b32.xlu1 %v3316_v36, %s2732_s13  ;;  %v606_v36 = vrot.slane %v3401_v27, 1  ;;  %v543_v16 = vshrl.u32 %v3484_v48, 16 }
 0x140   :  { %v2500_v51 = vcombine.low %v1074_v35, %v1076_v63  ;;  %575 = vrot.lane.b32.xlu0 %v3490_v26, %s2727_s10 }
 0x141   :  { %v3500_v3 = vpop.permute.xlu1 %559  ;;  %v548_v25 = vor.u32 %v547_v44, %v543_v16 }
 0x142   :  { %v3503_v47 = vpop.permute.xlu0 %649  ;;  %2635 = vmatmul.mubr.msk.bf16.vlgmr.msra.gmra.mrb[0].mxu0 %vm1167_vm15, %v2500_v51  ;;  %v853_v51 = vsel %vm843_vm7, %v3049_v52, %v3443_v8  ;;  %v855_v1 = vsel %vm843_vm7, %v3064_v56, %v3500_v3 }
 0x143   :  { %573 = vrot.lane.b32.xlu1 %v534_v7, %s2727_s10  ;;  %v884_v16 = vsel %vm874_vm8, %v853_v51, %v3356_v40  ;;  %v886_v44 = vsel %vm874_vm8, %v855_v1, %v3374_v0 }
 0x144   :  { %631 = vrot.lane.b32.xlu0 %v3381_v61, %s2728_s11  ;;  %v386_v61 = vrot.slane %v384_v53, 7  ;;  %v915_v52 = vsel %vm905_vm9, %v884_v16, %v3503_v47  ;;  %v857_v47 = vsel %vm843_vm7, %v3111_v57, %v3468_v20 }
 0x145   :  { %v3509_v45 = vpop.permute.xlu1 %563 }
 0x146   :  { %v3513_v15 = vpop.permute.xlu0 %653  ;;  %v389_v17 = vor.u32 %v387_v43, %v386_v61  ;;  %v859_v56 = vsel %vm843_vm7, %v3138_v42, %v3509_v45 }
 0x147   :  { %835 = vrot.lane.b32.xlu1 %v606_v36, %s2732_s13 }
 0x148   :  { %635 = vrot.lane.b32.xlu0 %v607_v39, %s2728_s11  ;;  %v424_v60 = vsel %vm3010_vm4, 0, %v389_v17 }
 0x149   :  { %v624_v24 = vpop.permute.xlu1 %623  ;;  %v443_v30 = vsel %vm3015_vm5, %v424_v60, 0 }
 0x14a   :  { %v696_v10 = vpop.permute.xlu0 %695  ;;  %v683_v21 = vshll.u32 %v443_v30, 16  ;;  %v720_v35 = vrot.slane %v443_v30, 1  ;;  %v890_v53 = vsel %vm874_vm8, %v859_v56, %v624_v24  ;;  %v888_v24 = vsel %vm874_vm8, %v857_v47, %v3487_v14 }
 0x14b   :  { %577 = vrot.lane.b32.xlu1 %v548_v25, %s2727_s10  ;;  %v948_v40 = vsel %vm938_vm10, %v915_v52, %v696_v10  ;;  %v919_v57 = vsel %vm905_vm9, %v888_v24, %v3513_v15 }
 0x14c   :  { %665 = vrot.lane.b32.xlu0 %v3401_v27, %s2729_s0  ;;  %v685_v34 = vrot.slane %v683_v21, 1 }
 0x14d   :  { %v652_v50 = vpop.permute.xlu1 %651 }
 0x14e   :  { %v3521_v59 = vpop.permute.xlu0 %699  ;;  %v917_v8 = vsel %vm905_vm9, %v886_v44, %v652_v50 }
 0x14f   :  { %633 = vrot.lane.b32.xlu1 %v606_v36, %s2728_s11  ;;  %v952_v14 = vsel %vm938_vm10, %v919_v57, %v3521_v59 }
 0x150   :  { %669 = vrot.lane.b32.xlu0 %v3484_v48, %s2729_s0 }
 0x151   :  { %v656_v13 = vpop.permute.xlu1 %655 }
 0x152   :  { %v730_v55 = vpop.permute.xlu0 %729 }
 0x153   :  { %637 = vrot.lane.b32.xlu1 %v3527_v23, %s2728_s11  ;;  %v981_v42 = vsel %vm971_vm11, %v948_v40, %v730_v55 }
 0x154   :  { %711 = vrot.lane.b32.xlu0 %v534_v7, %s2733_s14  ;;  %v681_v7 = vshrl.u32 %v443_v30, 16 }
 0x155   :  { %v698_v38 = vpop.permute.xlu1 %697 }
 0x156   :  { %v3534_v41 = vpop.permute.xlu0 %733  ;;  %v686_v12 = vor.u32 %v685_v34, %v681_v7 }
 0x157   :  { %667 = vrot.lane.b32.xlu1 %v3424_v49, %s2729_s0  ;;  %v985_v15 = vsel %vm971_vm11, %v952_v14, %v3534_v41 }
 0x158   :  { %715 = vrot.lane.b32.xlu0 %v548_v25, %s2733_s14 }
 0x159   :  { %v702_v18 = vpop.permute.xlu1 %701 }
 0x15a   :  { %v762_v11 = vpop.permute.xlu0 %761 }
 0x15b   :  { %671 = vrot.lane.b32.xlu1 %v443_v30, %s2729_s0  ;;  %v1014_v61 = vsel %vm1004_vm12, %v981_v42, %v762_v11 }
 0x15c   :  { %745 = vrot.lane.b32.xlu0 %v606_v36, %s2731_s12 }
 0x15d   :  { %v732_v31 = vpop.permute.xlu1 %731 }
 0x15e   :  { %v766_v46 = vpop.permute.xlu0 %765 }
 0x15f   :  { %713 = vrot.lane.b32.xlu1 %v3490_v26, %s2733_s14  ;;  %v1018_v59 = vsel %vm1004_vm12, %v985_v15, %v766_v46 }
 0x160   :  { %749 = vrot.lane.b32.xlu0 %v3527_v23, %s2731_s12 }
 0x161   :  { %v736_v4 = vpop.permute.xlu1 %735 }
 0x162   :  { %v792_v28 = vpop.permute.xlu0 %791 }
 0x163   :  { %717 = vrot.lane.b32.xlu1 %v686_v12, %s2733_s14  ;;  %v1046_v50 = vsel %vm1036_vm13, %v1014_v61, %v792_v28 }
 0x164   :  { %777 = vrot.lane.b32.xlu0 %v3424_v49, %s2730_s22 }
 0x165   :  { %v764_v29 = vpop.permute.xlu1 %763 }
 0x166   :  { %v796_v22 = vpop.permute.xlu0 %795 }
 0x167   :  { %747 = vrot.lane.b32.xlu1 %v607_v39, %s2731_s12  ;;  %v1050_v21 = vsel %vm1036_vm13, %v1018_v59, %v796_v22 }
 0x168   :  { %781 = vrot.lane.b32.xlu0 %v443_v30, %s2730_s22 }
 0x169   :  { %v3552_v5 = vpop.permute.xlu1 %767 }
 0x16a   :  { %v822_v63 = vpop.permute.xlu0 %821 }
 0x16b   :  { %751 = vrot.lane.b32.xlu1 %v720_v35, %s2731_s12  ;;  %v1078_v55 = vsel %vm1068_vm14, %v1046_v50, %v822_v63 }
 0x16c   :  { %809 = vrot.lane.b32.xlu0 %v548_v25, %s2734_s19  ;;  %v950_v25 = vsel %vm938_vm10, %v917_v8, %v698_v38 }
 0x16d   :  { %v794_v19 = vpop.permute.xlu1 %793  ;;  %v983_v45 = vsel %vm971_vm11, %v950_v25, %v732_v31 }
 0x16e   :  { %v3562_v36 = vpop.permute.xlu0 %565  ;;  %v1016_v43 = vsel %vm1004_vm12, %v983_v45, %v764_v29 }
 0x16f   :  { %779 = vrot.lane.b32.xlu1 %v3484_v48, %s2730_s22  ;;  %v861_v24 = vsel %vm843_vm7, %v3222_v58, %v3562_v36 }
 0x170   :  { %837 = vrot.lane.b32.xlu0 %v607_v39, %s2732_s13  ;;  %v921_v39 = vsel %vm905_vm9, %v890_v53, %v656_v13 }
 0x171   :  { %v3577_v3 = vpop.permute.xlu1 %797  ;;  %v954_v10 = vsel %vm938_vm10, %v921_v39, %v702_v18 }
 0x172   :  { %v3582_v0 = vpop.permute.xlu0 %827  ;;  %v987_v20 = vsel %vm971_vm11, %v954_v10, %v736_v4 }
 0x173   :  { %807 = vrot.lane.b32.xlu1 %v3490_v26, %s2734_s19  ;;  %v1048_v26 = vsel %vm1036_vm13, %v1016_v43, %v794_v19  ;;  %v1020_v13 = vsel %vm1004_vm12, %v987_v20, %v3552_v5 }
 0x174   :  { %841 = vrot.lane.b32.xlu0 %v720_v35, %s2732_s13  ;;  %v1052_v30 = vsel %vm1036_vm13, %v1020_v13, %v3577_v3 }
 0x175   :  { %v824_v17 = vpop.permute.xlu1 %823  ;;  %v1084_v31 = vsel %vm1068_vm14, %v1052_v30, %v3582_v0 }
 0x176   :  { %v1080_v60 = vsel %vm1068_vm14, %v1048_v26, %v824_v17  ;;  %v3609_v38 = vpop.permute.xlu0 %569 }
 0x177   :  { %v2501_v18 = vcombine.low %v1078_v55, %v1080_v60  ;;  %811 = vrot.lane.b32.xlu1 %v686_v12, %s2734_s19  ;;  %v865_v30 = vsel %vm843_vm7, %v3240_v6, %v3609_v38 }
 0x178   :  { %1831 = vrot.lane.b32.xlu0 %v2726_v32, %s2735_s1 }
 0x179   :  { %v826_v11 = vpop.permute.xlu1 %825  ;;  %2638 = vmatprep.mubr.msk.bf16.mxu0 %vm1167_vm15, %v2501_v18 }
 0x17a   :  { %v1082_v7 = vsel %vm1068_vm14, %v1050_v21, %v826_v11  ;;  %v628_v34 = vpop.permute.xlu0 %627 }
 0x17b   :  { %v2502_v41 = vcombine.low %v1082_v7, %v1084_v31  ;;  %839 = vrot.lane.b32.xlu1 %v3527_v23, %s2732_s13 }
 0x17c   :  { %1861 = vrot.lane.b32.xlu0 %v2993_v33, %s2737_s24 }
 0x17d   :  { %v568_v4 = vpop.permute.xlu1 %567  ;;  %2639 = vmatmul.mubr.msk.bf16.gmra.mrb[4].mxu0 %vm1167_vm15, %v2502_v41 }
 0x17e   :  { %v658_v12 = vpop.permute.xlu0 %657  ;;  %v863_v36 = vsel %vm843_vm7, %v3264_v9, %v568_v4 }
 0x17f   :  { %1615 = vrot.lane.b32.xlu1 %v2993_v33, %s2728_s11  ;;  %v923_v10 = vsel %vm905_vm9, %v3395_v37, %v658_v12  ;;  %v894_v59 = vsel %vm874_vm8, %v863_v36, %v628_v34 }
 0x181   :  { %v626_v46 = vpop.permute.xlu1 %625 }
 0x182   :  { %v662_v28 = vpop.permute.xlu0 %661  ;;  %v892_v32 = vsel %vm874_vm8, %v861_v24, %v626_v46 }
 0x183   :  { %1673 = vrot.lane.b32.xlu1 %v2993_v33, %s2733_s14  ;;  %v927_v9 = vsel %vm905_vm9, %v894_v59, %v662_v28 }
 0x185   :  { %v630_v29 = vpop.permute.xlu1 %629 }
 0x186   :  { %v704_v22 = vpop.permute.xlu0 %703  ;;  %v896_v21 = vsel %vm874_vm8, %v865_v30, %v630_v29 }
 0x187   :  { %1891 = vrot.lane.b32.xlu1 %v2993_v33, %s2736_s23  ;;  %v956_v57 = vsel %vm938_vm10, %v923_v10, %v704_v22 }
 0x189   :  { %v660_v35 = vpop.permute.xlu1 %659 }
 0x18a   :  { %v708_v63 = vpop.permute.xlu0 %707  ;;  %v925_v61 = vsel %vm905_vm9, %v892_v32, %v660_v35 }
 0x18b   :  { %v960_v7 = vsel %vm938_vm10, %v927_v9, %v708_v63 }
 0x18d   :  { %v664_v51 = vpop.permute.xlu1 %663 }
 0x18e   :  { %v738_v1 = vpop.permute.xlu0 %737  ;;  %v929_v11 = vsel %vm905_vm9, %v896_v21, %v664_v51 }
 0x18f   :  { %v989_v50 = vsel %vm971_vm11, %v956_v57, %v738_v1 }
 0x191   :  { %v706_v19 = vpop.permute.xlu1 %705 }
 0x192   :  { %v742_v23 = vpop.permute.xlu0 %741  ;;  %v958_v33 = vsel %vm938_vm10, %v925_v61, %v706_v19 }
 0x193   :  { %v993_v12 = vsel %vm971_vm11, %v960_v7, %v742_v23 }
 0x195   :  { %v710_v16 = vpop.permute.xlu1 %709 }
 0x196   :  { %v770_v44 = vpop.permute.xlu0 %769  ;;  %v962_v41 = vsel %vm938_vm10, %v929_v11, %v710_v16 }
 0x197   :  { %v1022_v17 = vsel %vm1004_vm12, %v989_v50, %v770_v44 }
 0x199   :  { %v740_v52 = vpop.permute.xlu1 %739 }
 0x19a   :  { %v774_v56 = vpop.permute.xlu0 %773  ;;  %v991_v26 = vsel %vm971_vm11, %v958_v33, %v740_v52 }
 0x19b   :  { %v1026_v38 = vsel %vm1004_vm12, %v993_v12, %v774_v56 }
 0x19d   :  { %v744_v8 = vpop.permute.xlu1 %743 }
 0x19e   :  { %v800_v53 = vpop.permute.xlu0 %799  ;;  %v995_v6 = vsel %vm971_vm11, %v962_v41, %v744_v8 }
 0x19f   :  { %v1054_v37 = vsel %vm1036_vm13, %v1022_v17, %v800_v53 }
 0x1a1   :  { %v772_v40 = vpop.permute.xlu1 %771 }
 0x1a2   :  { %v804_v25 = vpop.permute.xlu0 %803  ;;  %v1024_v58 = vsel %vm1004_vm12, %v991_v26, %v772_v40 }
 0x1a3   :  { %v1058_v46 = vsel %vm1036_vm13, %v1026_v38, %v804_v25 }
 0x1a5   :  { %v776_v47 = vpop.permute.xlu1 %775 }
 0x1a6   :  { %v830_v39 = vpop.permute.xlu0 %829  ;;  %v1028_v34 = vsel %vm1004_vm12, %v995_v6, %v776_v47 }
 0x1a7   :  { %v1086_v55 = vsel %vm1068_vm14, %v1054_v37, %v830_v39 }
 0x1a9   :  { %v802_v42 = vpop.permute.xlu1 %801 }
 0x1aa   :  { %v3635_v45 = vpop.permute.xlu0 %571  ;;  %v1056_v14 = vsel %vm1036_vm13, %v1024_v58, %v802_v42 }
 0x1ab   :  { %v867_v26 = vsel %vm843_vm7, %v3335_v54, %v3635_v45 }
 0x1ad   :  { %v806_v43 = vpop.permute.xlu1 %805 }
 0x1ae   :  { %v834_v20 = vpop.permute.xlu0 %833  ;;  %v1060_v28 = vsel %vm1036_vm13, %v1028_v34, %v806_v43 }
 0x1af   :  { %v1090_v22 = vsel %vm1068_vm14, %v1058_v46, %v834_v20 }
 0x1b1   :  { %v832_v13 = vpop.permute.xlu1 %831 }
 0x1b2   :  { %v1088_v60 = vsel %vm1068_vm14, %v1056_v14, %v832_v13  ;;  %v576_v15 = vpop.permute.xlu0 %575 }
 0x1b3   :  { %v2503_v18 = vcombine.low %v1086_v55, %v1088_v60  ;;  %v871_v20 = vsel %vm843_vm7, %v3424_v49, %v576_v15 }
 0x1b5   :  { %v574_v31 = vpop.permute.xlu1 %573  ;;  %2642 = vmatprep.mubr.msk.bf16.mxu0 %vm1167_vm15, %v2503_v18 }
 0x1b6   :  { %v632_v4 = vpop.permute.xlu0 %631  ;;  %v869_v17 = vsel %vm843_vm7, %v3401_v27, %v574_v31 }
 0x1b9   :  { %v836_v29 = vpop.permute.xlu1 %835 }
 0x1ba   :  { %v1092_v35 = vsel %vm1068_vm14, %v1060_v28, %v836_v29  ;;  %v636_v63 = vpop.permute.xlu0 %635 }
 0x1bb   :  { %v2504_v51 = vcombine.low %v1090_v22, %v1092_v35  ;;  %v902_v58 = vsel %vm874_vm8, %v871_v20, %v636_v63 }
 0x1bd   :  { %v578_v1 = vpop.permute.xlu1 %577  ;;  %2643 = vmatmul.mubr.msk.bf16.gmra.mrb[8].mxu0 %vm1167_vm15, %v2504_v51 }
 0x1be   :  { %v666_v19 = vpop.permute.xlu0 %665  ;;  %v873_v57 = vsel %vm843_vm7, %v3484_v48, %v578_v1  ;;  %v898_v48 = vsel %vm874_vm8, %v867_v26, %v632_v4  ;;  %vm2243_vm7 = vcmask 588800  }
 0x1bf   :  { %v931_v60 = vsel %vm905_vm9, %v898_v48, %v666_v19 }
 0x1c1   :  { %v634_v23 = vpop.permute.xlu1 %633 }
 0x1c2   :  { %v670_v16 = vpop.permute.xlu0 %669  ;;  %v900_v14 = vsel %vm874_vm8, %v869_v17, %v634_v23 }
 0x1c3   :  { %v935_v49 = vsel %vm905_vm9, %v902_v58, %v670_v16 }
 0x1c5   :  { %v638_v44 = vpop.permute.xlu1 %637 }
 0x1c6   :  { %v712_v52 = vpop.permute.xlu0 %711  ;;  %v904_v33 = vsel %vm874_vm8, %v873_v57, %v638_v44 }
 0x1c7   :  { %v964_v45 = vsel %vm938_vm10, %v931_v60, %v712_v52 }
 0x1c9   :  { %v668_v56 = vpop.permute.xlu1 %667 }
 0x1ca   :  { %v716_v8 = vpop.permute.xlu0 %715  ;;  %v933_v54 = vsel %vm905_vm9, %v900_v14, %v668_v56 }
 0x1cb   :  { %v968_v27 = vsel %vm938_vm10, %v935_v49, %v716_v8 }
 0x1cd   :  { %v672_v53 = vpop.permute.xlu1 %671 }
 0x1ce   :  { %v746_v40 = vpop.permute.xlu0 %745  ;;  %v937_v50 = vsel %vm905_vm9, %v904_v33, %v672_v53 }
 0x1cf   :  { %v997_v18 = vsel %vm971_vm11, %v964_v45, %v746_v40 }
 0x1d1   :  { %v714_v25 = vpop.permute.xlu1 %713 }
 0x1d2   :  { %v750_v47 = vpop.permute.xlu0 %749  ;;  %v966_v15 = vsel %vm938_vm10, %v933_v54, %v714_v25 }
 0x1d3   :  { %v1001_v30 = vsel %vm971_vm11, %v968_v27, %v750_v47 }
 0x1d5   :  { %v718_v39 = vpop.permute.xlu1 %717 }
 0x1d6   :  { %v778_v42 = vpop.permute.xlu0 %777  ;;  %v970_v36 = vsel %vm938_vm10, %v937_v50, %v718_v39 }
 0x1d7   :  { %v1030_v31 = vsel %vm1004_vm12, %v997_v18, %v778_v42 }
 0x1d9   :  { %v748_v24 = vpop.permute.xlu1 %747 }
 0x1da   :  { %v782_v32 = vpop.permute.xlu0 %781  ;;  %v999_v59 = vsel %vm971_vm11, %v966_v15, %v748_v24 }
 0x1db   :  { %v1034_v21 = vsel %vm1004_vm12, %v1001_v30, %v782_v32 }
 0x1dd   :  { %v752_v10 = vpop.permute.xlu1 %751 }
 0x1de   :  { %v810_v61 = vpop.permute.xlu0 %809  ;;  %v1003_v13 = vsel %vm971_vm11, %v970_v36, %v752_v10 }
 0x1df   :  { %v1035_v9 = vsel %vm1004_vm12, %v1003_v13, %v3552_v5 }
 0x1e0   :  { %v1067_v12 = vsel %vm1036_vm13, %v1035_v9, %v3577_v3  ;;  %v3720_v3 = vld [vmem:[%s4430_s2] ss:$0 sm:$0xff]  ;;  %s2738_s2 = smov 40  }
 0x1e1   :  { %v780_v43 = vpop.permute.xlu1 %779  ;;  %v1099_v29 = vsel %vm1068_vm14, %v1067_v12, %v3582_v0 }
 0x1e2   :  { %v838_v55 = vpop.permute.xlu0 %837  ;;  %v1032_v7 = vsel %vm1004_vm12, %v999_v59, %v780_v43 }
 0x1e3   :  { %v1064_v46 = vsel %vm1036_vm13, %v1032_v7, %v810_v61 }
 0x1e5   :  { %v808_v37 = vpop.permute.xlu1 %807 }
 0x1e6   :  { %v1062_v4 = vsel %vm1036_vm13, %v1030_v31, %v808_v37  ;;  %v842_v6 = vpop.permute.xlu0 %841 }
 0x1e7   :  { %v1094_v5 = vsel %vm1068_vm14, %v1062_v4, %v838_v55 }
 0x1e9   :  { %v812_v11 = vpop.permute.xlu1 %811 }
 0x1ea   :  { %v1066_v41 = vsel %vm1036_vm13, %v1034_v21, %v812_v11 }
 0x1eb   :  { %v1098_v38 = vsel %vm1068_vm14, %v1066_v41, %v842_v6 }
 0x1ec   :  { %v2506_v35 = vcombine.low %v1098_v38, %v1099_v29 }
 0x1ed   :  { %v840_v34 = vpop.permute.xlu1 %839 }
 0x1ee   :  { %v1096_v28 = vsel %vm1068_vm14, %v1064_v46, %v840_v34 }
 0x1ef   :  { %v2505_v22 = vcombine.low %v1094_v5, %v1096_v28 }
 0x1f1   :  { %2646 = vmatprep.mubr.msk.bf16.mxu0 %vm1167_vm15, %v2505_v22 }
 0x1f2   :  { %2647 = vmatmul.mubr.msk.bf16.gmra.mrb[12].mxu0 %vm1167_vm15, %v2506_v35 }
 0x215   :  { %v2636_v63 = vpop.f32.mrb[0].mxu0 }
 0x216   :  { %v1239_v51 = vadd.f32 %v2636_v63, %v3720_v3  ;;  %v1230_v1 = vpop.f32.mrb[1].mxu0 }
 0x217   :  { %v1231_v19 = vadd.f32 %v3720_v3, %v1230_v1  ;;  %v2637_v23 = vpop.f32.mrb[2].mxu0 }
 0x218   :  { %v1295_v16 = vmax.f32 %v1239_v51, 0.0  ;;  %v1242_v0 = vadd.f32 %v2637_v23, %v3720_v3  ;;  %v1233_v44 = vpop.f32.mrb[3].mxu0 }
 0x219   :  { %v1293_v52 = vmax.f32 %v1231_v19, 0.0  ;;  %v1234_v47 = vadd.f32 %v3720_v3, %v1233_v44 }
 0x21a   :  { %v2574_v56 = vpack.c.bf16 %v1295_v16, %v1295_v16  ;;  %v1296_v8 = vmax.f32 %v1242_v0, 0.0 }
 0x21b   :  { %v2572_v53 = vpack.c.bf16 %v1293_v52, %v1293_v52  ;;  %v1294_v33 = vmax.f32 %v1234_v47, 0.0 }
 0x21c   :  { %v1372_v40 = vshrl.u32 %v2574_v56, 16  ;;  %v2575_v25 = vpack.c.bf16 %v1296_v8, %v1296_v8  ;;  %v1375_v24 = vshll.u32 %v2574_v56, 16 }
 0x21d   :  { %v1358_v39 = vshrl.u32 %v2572_v53, 16  ;;  %v1361_v61 = vshll.u32 %v2572_v53, 16  ;;  %v2573_v36 = vpack.c.bf16 %v1294_v33, %v1294_v33 }
 0x21e   :  { %v1374_v42 = vrot.slane %v1372_v40, 7  ;;  %v1379_v32 = vshrl.u32 %v2575_v25, 16  ;;  %v1382_v26 = vshll.u32 %v2575_v25, 16 }
 0x21f   :  { %v1360_v10 = vrot.slane %v1358_v39, 7  ;;  %v1365_v13 = vshrl.u32 %v2573_v36, 16  ;;  %v1368_v54 = vshll.u32 %v2573_v36, 16 }
 0x220   :  { %v1377_v43 = vor.u32 %v1375_v24, %v1374_v42  ;;  %v1381_v57 = vrot.slane %v1379_v32, 7 }
 0x221   :  { %v1363_v20 = vor.u32 %v1361_v61, %v1360_v10  ;;  %v1367_v60 = vrot.slane %v1365_v13, 7 }
 0x222   :  { %v1487_v50 = vsel %vm3010_vm4, 0, %v1377_v43  ;;  %v1384_v58 = vor.u32 %v1382_v26, %v1381_v57 }
 0x223   :  { %v3730_v17 = vsel %vm3015_vm5, %v1487_v50, 0  ;;  %v1485_v37 = vsel %vm3010_vm4, 0, %v1363_v20  ;;  %v1370_v27 = vor.u32 %v1368_v54, %v1367_v60 }
 0x224   :  { %1819 = vrot.lane.b32.xlu0 %v3730_v17, %s2735_s1  ;;  %1709 = vrot.lane.b32.xlu1 %v3730_v17, %s2730_s22  ;;  %v1661_v48 = vrot.slane %v3730_v17, 1  ;;  %v3741_v14 = vsel %vm3015_vm5, %v1485_v37, 0  ;;  %v1488_v49 = vsel %vm3010_vm4, 0, %v1384_v58  ;;  %v1534_v59 = vshll.u32 %v3730_v17, 16 }
 0x225   :  { %v3750_v55 = vsel %vm3015_vm5, %v1488_v49, 0  ;;  %v1659_v45 = vrot.slane %v3741_v14, 1  ;;  %v1486_v15 = vsel %vm3010_vm4, 0, %v1370_v27  ;;  %v1532_v11 = vshrl.u32 %v3730_v17, 16 }
 0x226   :  { %v3765_v30 = vsel %vm3015_vm5, %v1486_v15, 0  ;;  %v1662_v18 = vrot.slane %v3750_v55, 1  ;;  %v1536_v9 = vrot.slane %v1534_v59, 1  ;;  %v1520_v7 = vshll.u32 %v3741_v14, 16 }
 0x227   :  { %v1660_v21 = vrot.slane %v3765_v30, 1  ;;  %v1541_v4 = vshll.u32 %v3750_v55, 16  ;;  %v1518_v12 = vshrl.u32 %v3741_v14, 16  ;;  %v1539_v34 = vshrl.u32 %v3750_v55, 16 }
 0x228   :  { %1679 = vrot.lane.b32.xlu0 %v1661_v48, %s2733_s14  ;;  %1705 = vrot.lane.b32.xlu1 %v3741_v14, %s2730_s22  ;;  %v1537_v31 = vor.u32 %v1536_v9, %v1532_v11  ;;  %v1522_v41 = vrot.slane %v1520_v7, 1  ;;  %v1527_v53 = vshll.u32 %v3765_v30, 16  ;;  %v1525_v57 = vshrl.u32 %v3765_v30, 16  ;;  %v2697_v7 = vld [vmem:[%s4431_s3 + $0x8] sm:$0xff]  }
 0x229   :  { %v1543_v38 = vrot.slane %v1541_v4, 1 }
 0x22a   :  { %v1523_v6 = vor.u32 %v1522_v41, %v1518_v12  ;;  %v1529_v24 = vrot.slane %v1527_v53, 1 }
 0x22b   :  { %v1544_v46 = vor.u32 %v1543_v38, %v1539_v34  ;;  %v3859_v38 = vpop.permute.xlu1 %1615  ;;  %v2698_v34 = vld [vmem:[%s4431_s3 + $0x10] sm:$0xff]  }
 0x22c   :  { %1789 = vrot.lane.b32.xlu1 %v1661_v48, %s2738_s2  ;;  %1711 = vrot.lane.b32.xlu0 %v3750_v55, %s2730_s22  ;;  %v1530_v33 = vor.u32 %v1529_v24, %v1525_v57 }
 0x230   :  { %1821 = vrot.lane.b32.xlu1 %v3750_v55, %s2735_s1  ;;  %1879 = vrot.lane.b32.xlu0 %v1661_v48, %s2736_s23 }
 0x234   :  { %1785 = vrot.lane.b32.xlu1 %v1659_v45, %s2738_s2  ;;  %1675 = vrot.lane.b32.xlu0 %v1659_v45, %s2733_s14 }
 0x238   :  { %1817 = vrot.lane.b32.xlu1 %v3765_v30, %s2735_s1  ;;  %1707 = vrot.lane.b32.xlu0 %v3765_v30, %s2730_s22 }
 0x23c   :  { %1881 = vrot.lane.b32.xlu1 %v1662_v18, %s2736_s23  ;;  %1791 = vrot.lane.b32.xlu0 %v1662_v18, %s2738_s2 }
 0x240   :  { %1681 = vrot.lane.b32.xlu1 %v1662_v18, %s2733_s14  ;;  %1787 = vrot.lane.b32.xlu0 %v1660_v21, %s2738_s2 }
 0x244   :  { %1677 = vrot.lane.b32.xlu1 %v1660_v21, %s2733_s14  ;;  %1621 = vrot.lane.b32.xlu0 %v1537_v31, %s2728_s11 }
 0x248   :  { %1877 = vrot.lane.b32.xlu1 %v1660_v21, %s2736_s23  ;;  %1849 = vrot.lane.b32.xlu0 %v1537_v31, %s2737_s24  ;;  %v2696_v21 = vld [vmem:[%s4431_s3] sm:$0xff]  }
 0x249   :  { %2650 = vmatprep.subr.bf16.mxu1 %v2696_v21 }
 0x24a   :  { %2651 = vmatpush3.bf16.msra.mxu1 %v2696_v21 }
 0x24b   :  { %2652 = vmatprep.subr.bf16.mxu1 %v2697_v7 }
 0x24c   :  { %1755 = vrot.lane.b32.xlu1 %v1537_v31, %s2732_s13  ;;  %1617 = vrot.lane.b32.xlu0 %v1523_v6, %s2728_s11 }
 0x24e   :  { %2653 = vmatpush3.bf16.msra.mxu1 %v2697_v7 }
 0x24f   :  { %2654 = vmatprep.subr.bf16.mxu1 %v2698_v34 }
 0x250   :  { %1751 = vrot.lane.b32.xlu1 %v1523_v6, %s2732_s13  ;;  %1757 = vrot.lane.b32.xlu0 %v1544_v46, %s2732_s13  ;;  %v2640_v5 = vpop.f32.mrb[4].mxu0 }
 0x251   :  { %v1255_v28 = vadd.f32 %v2640_v5, %v3720_v3  ;;  %v1246_v29 = vpop.f32.mrb[5].mxu0 }
 0x252   :  { %v1247_v22 = vadd.f32 %v3720_v3, %v1246_v29  ;;  %v2641_v35 = vpop.f32.mrb[6].mxu0  ;;  %v2699_v29 = vld [vmem:[%s4431_s3 + $0x18] sm:$0xff]   ;;  %2655 = vmatpush3.bf16.msra.mxu1 %v2698_v34 }
 0x253   :  { %v1299_v63 = vmax.f32 %v1255_v28, 0.0  ;;  %v1258_v51 = vadd.f32 %v2641_v35, %v3720_v3  ;;  %v1249_v1 = vpop.f32.mrb[7].mxu0  ;;  %2656 = vmatprep.subr.bf16.mxu1 %v2699_v29 }
 0x254   :  { %v1297_v19 = vmax.f32 %v1247_v22, 0.0  ;;  %1851 = vrot.lane.b32.xlu1 %v1544_v46, %s2737_s24  ;;  %v1250_v43 = vadd.f32 %v3720_v3, %v1249_v1  ;;  %v3872_v1 = vpop.permute.xlu0 %1831 }
 0x255   :  { %v2578_v23 = vpack.c.bf16 %v1299_v63, %v1299_v63  ;;  %v1300_v44 = vmax.f32 %v1258_v51, 0.0  ;;  %v3870_v63 = vpop.permute.xlu1 %1673 }
 0x256   :  { %v2576_v16 = vpack.c.bf16 %v1297_v19, %v1297_v19  ;;  %v1298_v26 = vmax.f32 %v1250_v43, 0.0  ;;  %2657 = vmatpush3.bf16.msra.mxu1 %v2699_v29 }
 0x257   :  { %v1400_v0 = vshrl.u32 %v2578_v23, 16  ;;  %v1403_v8 = vshll.u32 %v2578_v23, 16  ;;  %v2579_v47 = vpack.c.bf16 %v1300_v44, %v1300_v44  ;;  %v2700_v23 = vld [vmem:[%s4431_s3 + $0x20] ss:$0 sps:$4 sm:$0xff]  }
 0x258   :  { %v1386_v52 = vshrl.u32 %v2576_v16, 16  ;;  %1623 = vrot.lane.b32.xlu1 %v1544_v46, %s2728_s11  ;;  %v1389_v42 = vshll.u32 %v2576_v16, 16  ;;  %v2577_v48 = vpack.c.bf16 %v1298_v26, %v1298_v26  ;;  %2677 = vmatprep.subr.msk.bf16.mxu1 %vm2268_vm0, %v2700_v23 }
 0x259   :  { %v1402_v56 = vrot.slane %v1400_v0, 7  ;;  %v1407_v61 = vshrl.u32 %v2579_v47, 16  ;;  %v1410_v58 = vshll.u32 %v2579_v47, 16  ;;  %v2270_v0 = vsel %vm2268_vm0, %v2700_v23, 0  ;;  %v3881_v44 = vpop.permute.xlu1 %1891 }
 0x25a   :  { %v1388_v25 = vrot.slane %v1386_v52, 7  ;;  %v1393_v13 = vshrl.u32 %v2577_v48, 16  ;;  %v1396_v45 = vshll.u32 %v2577_v48, 16  ;;  %2659 = vmatpush3.bf16.msra.mxu1 %v2270_v0 }
 0x25b   :  { %v1405_v40 = vor.u32 %v1403_v8, %v1402_v56  ;;  %v1409_v50 = vrot.slane %v1407_v61, 7  ;;  %v3883_v56 = vpop.permute.xlu0 %1861 }
 0x25c   :  { %v1391_v10 = vor.u32 %v1389_v42, %v1388_v25  ;;  %v1395_v27 = vrot.slane %v1393_v13, 7 }
 0x25d   :  { %v1491_v39 = vsel %vm3010_vm4, 0, %v1405_v40  ;;  %v1412_v37 = vor.u32 %v1410_v58, %v1409_v50 }
 0x25e   :  { %v3801_v32 = vsel %vm3015_vm5, %v1491_v39, 0  ;;  %v1489_v20 = vsel %vm3010_vm4, 0, %v1391_v10  ;;  %v1398_v15 = vor.u32 %v1396_v45, %v1395_v27 }
 0x25f   :  { %1827 = vrot.lane.b32.xlu0 %v3801_v32, %s2735_s1  ;;  %1717 = vrot.lane.b32.xlu1 %v3801_v32, %s2730_s22  ;;  %v3815_v36 = vsel %vm3015_vm5, %v1489_v20, 0  ;;  %v1665_v49 = vrot.slane %v3801_v32, 1  ;;  %v1492_v60 = vsel %vm3010_vm4, 0, %v1412_v37  ;;  %v1562_v31 = vshll.u32 %v3801_v32, 16 }
 0x260   :  { %v1508_v54 = vsel %vm3015_vm5, %v1492_v60, 0  ;;  %v1663_v18 = vrot.slane %v3815_v36, 1  ;;  %v1490_v59 = vsel %vm3010_vm4, 0, %v1398_v15  ;;  %v1548_v12 = vshll.u32 %v3815_v36, 16 }
 0x261   :  { %v3842_v9 = vsel %vm3015_vm5, %v1490_v59, 0  ;;  %v1783_v41 = vrot.slane %v1508_v54, 1  ;;  %v1564_v4 = vrot.slane %v1562_v31, 1  ;;  %v1560_v6 = vshrl.u32 %v3801_v32, 16 }
 0x262   :  { %v1664_v11 = vrot.slane %v3842_v9, 1  ;;  %v1550_v5 = vrot.slane %v1548_v12, 1  ;;  %v1740_v28 = vshll.u32 %v1508_v54, 16  ;;  %v1546_v22 = vshrl.u32 %v3815_v36, 16 }
 0x263   :  { %1753 = vrot.lane.b32.xlu0 %v1530_v33, %s2732_s13  ;;  %1619 = vrot.lane.b32.xlu1 %v1530_v33, %s2728_s11  ;;  %v1565_v46 = vor.u32 %v1564_v4, %v1560_v6  ;;  %v1738_v19 = vshrl.u32 %v1508_v54, 16  ;;  %v1555_v58 = vshll.u32 %v3842_v9, 16  ;;  %v1553_v31 = vshrl.u32 %v3842_v9, 16 }
 0x264   :  { %v1551_v35 = vor.u32 %v1550_v5, %v1546_v22  ;;  %v1742_v51 = vrot.slane %v1740_v28, 1 }
 0x265   :  { %v1557_v27 = vrot.slane %v1555_v58, 1 }
 0x266   :  { %v1743_v16 = vor.u32 %v1742_v51, %v1738_v19 }
 0x267   :  { %1847 = vrot.lane.b32.xlu1 %v1530_v33, %s2737_s24  ;;  %1823 = vrot.lane.b32.xlu0 %v3815_v36, %s2735_s1 }
 0x26b   :  { %1713 = vrot.lane.b32.xlu1 %v3815_v36, %s2730_s22  ;;  %1687 = vrot.lane.b32.xlu0 %v1665_v49, %s2733_s14 }
 0x26f   :  { %1797 = vrot.lane.b32.xlu1 %v1665_v49, %s2738_s2  ;;  %1719 = vrot.lane.b32.xlu0 %v1508_v54, %s2730_s22 }
 0x273   :  { %1829 = vrot.lane.b32.xlu1 %v1508_v54, %s2735_s1  ;;  %1887 = vrot.lane.b32.xlu0 %v1665_v49, %s2736_s23 }
 0x277   :  { %1793 = vrot.lane.b32.xlu1 %v1663_v18, %s2738_s2  ;;  %1883 = vrot.lane.b32.xlu0 %v1663_v18, %s2736_s23 }
 0x27b   :  { %1825 = vrot.lane.b32.xlu1 %v3842_v9, %s2735_s1  ;;  %1683 = vrot.lane.b32.xlu0 %v1663_v18, %s2733_s14 }
 0x27f   :  { %1685 = vrot.lane.b32.xlu1 %v1664_v11, %s2733_s14  ;;  %1715 = vrot.lane.b32.xlu0 %v3842_v9, %s2730_s22 }
 0x283   :  { %1885 = vrot.lane.b32.xlu1 %v1664_v11, %s2736_s23  ;;  %1799 = vrot.lane.b32.xlu0 %v1783_v41, %s2738_s2 }
 0x287   :  { %1763 = vrot.lane.b32.xlu1 %v1565_v46, %s2732_s13  ;;  %1889 = vrot.lane.b32.xlu0 %v1783_v41, %s2736_s23  ;;  %v1558_v41 = vor.u32 %v1557_v27, %v1553_v31 }
 0x28b   :  { %1759 = vrot.lane.b32.xlu1 %v1551_v35, %s2732_s13  ;;  %1795 = vrot.lane.b32.xlu0 %v1664_v11, %s2738_s2 }
 0x28f   :  { %1859 = vrot.lane.b32.xlu1 %v1743_v16, %s2737_s24  ;;  %1629 = vrot.lane.b32.xlu0 %v1565_v46, %s2728_s11 }
 0x290   :  { %v2644_v52 = vpop.f32.mrb[8].mxu0 }
 0x291   :  { %v1271_v8 = vadd.f32 %v2644_v52, %v3720_v3  ;;  %v1262_v53 = vpop.f32.mrb[9].mxu0 }
 0x292   :  { %v1263_v40 = vadd.f32 %v3720_v3, %v1262_v53  ;;  %v2645_v25 = vpop.f32.mrb[10].mxu0 }
 0x293   :  { %v1303_v47 = vmax.f32 %v1271_v8, 0.0  ;;  %v1274_v39 = vadd.f32 %v2645_v25, %v3720_v3  ;;  %1857 = vrot.lane.b32.xlu0 %v1565_v46, %s2737_s24  ;;  %v1265_v42 = vpop.f32.mrb[11].mxu0 }
 0x294   :  { %v1301_v24 = vmax.f32 %v1263_v40, 0.0  ;;  %v1266_v11 = vadd.f32 %v3720_v3, %v1265_v42 }
 0x295   :  { %v2582_v10 = vpack.c.bf16 %v1303_v47, %v1303_v47  ;;  %v1304_v20 = vmax.f32 %v1274_v39, 0.0 }
 0x296   :  { %v3889_v61 = vpop.permute.xlu1 %1709  ;;  %v3891_v43 = vpop.permute.xlu0 %1819  ;;  %v2580_v33 = vpack.c.bf16 %v1301_v24, %v1301_v24  ;;  %v1302_v46 = vmax.f32 %v1266_v11, 0.0 }
 0x297   :  { %v1428_v57 = vshrl.u32 %v2582_v10, 16  ;;  %1853 = vrot.lane.b32.xlu0 %v1551_v35, %s2737_s24  ;;  %v1431_v26 = vshll.u32 %v2582_v10, 16  ;;  %v2583_v60 = vpack.c.bf16 %v1304_v20, %v1304_v20 }
 0x298   :  { %v1414_v13 = vshrl.u32 %v2580_v33, 16  ;;  %v1417_v7 = vshll.u32 %v2580_v33, 16 }
 0x299   :  { %v1430_v50 = vrot.slane %v1428_v57, 7  ;;  %v1435_v21 = vshrl.u32 %v2583_v60, 16  ;;  %v1438_v5 = vshll.u32 %v2583_v60, 16 }
 0x29a   :  { %v3895_v37 = vpop.permute.xlu1 %1705  ;;  %v3897_v48 = vpop.permute.xlu0 %1679  ;;  %v1416_v59 = vrot.slane %v1414_v13, 7 }
 0x29b   :  { %v1433_v49 = vor.u32 %v1431_v26, %v1430_v50  ;;  %1625 = vrot.lane.b32.xlu0 %v1551_v35, %s2728_s11  ;;  %v1437_v34 = vrot.slane %v1435_v21, 7  ;;  %v2581_v35 = vpack.c.bf16 %v1302_v46, %v1302_v46 }
 0x29c   :  { %v1419_v6 = vor.u32 %v1417_v7, %v1416_v59 }
 0x29d   :  { %v1495_v54 = vsel %vm3010_vm4, 0, %v1433_v49  ;;  %v1440_v22 = vor.u32 %v1438_v5, %v1437_v34  ;;  %v1421_v8 = vshrl.u32 %v2581_v35, 16  ;;  %v1424_v39 = vshll.u32 %v2581_v35, 16 }
 0x29e   :  { %v3902_v45 = vpop.permute.xlu1 %1789  ;;  %v3904_v15 = vpop.permute.xlu0 %1711  ;;  %v3908_v18 = vsel %vm3015_vm5, %v1495_v54, 0  ;;  %v1493_v51 = vsel %vm3010_vm4, 0, %v1419_v6 }
 0x29f   :  { %1765 = vrot.lane.b32.xlu0 %v1743_v16, %s2732_s13  ;;  %1725 = vrot.lane.b32.xlu1 %v3908_v18, %s2730_s22  ;;  %v1668_v19 = vrot.slane %v3908_v18, 1  ;;  %v3937_v0 = vsel %vm3015_vm5, %v1493_v51, 0  ;;  %v1496_v52 = vsel %vm3010_vm4, 0, %v1440_v22  ;;  %v1423_v47 = vrot.slane %v1421_v8, 7 }
 0x2a0   :  { %v3950_v25 = vsel %vm3015_vm5, %v1496_v52, 0  ;;  %v1666_v57 = vrot.slane %v3937_v0, 1  ;;  %v1583_v13 = vshll.u32 %v3908_v18, 16  ;;  %v1581_v31 = vshrl.u32 %v3908_v18, 16 }
 0x2a1   :  { %v1426_v24 = vor.u32 %v1424_v39, %v1423_v47  ;;  %v1669_v49 = vrot.slane %v3950_v25, 1  ;;  %v1590_v21 = vshll.u32 %v3950_v25, 16  ;;  %v1588_v52 = vshrl.u32 %v3950_v25, 16 }
 0x2a2   :  { %v3915_v4 = vpop.permute.xlu1 %1821  ;;  %v3917_v12 = vpop.permute.xlu0 %1879  ;;  %v1585_v59 = vrot.slane %v1583_v13, 1 }
 0x2a3   :  { %1835 = vrot.lane.b32.xlu0 %v3908_v18, %s2735_s1  ;;  %1627 = vrot.lane.b32.xlu1 %v1558_v41, %s2728_s11  ;;  %v1494_v20 = vsel %vm3010_vm4, 0, %v1426_v24  ;;  %v1592_v6 = vrot.slane %v1590_v21, 1 }
 0x2a4   :  { %v3975_v58 = vsel %vm3015_vm5, %v1494_v20, 0 }
 0x2a5   :  { %v1667_v27 = vrot.slane %v3975_v58, 1  ;;  %v1576_v34 = vshll.u32 %v3975_v58, 16  ;;  %v4002_v24 = vor.u32 %v1592_v6, %v1588_v52  ;;  %v1574_v21 = vshrl.u32 %v3975_v58, 16 }
 0x2a6   :  { %v3922_v28 = vpop.permute.xlu1 %1785  ;;  %v3924_v29 = vpop.permute.xlu0 %1675 }
 0x2a7   :  { %1761 = vrot.lane.b32.xlu0 %v1558_v41, %s2732_s13  ;;  %1855 = vrot.lane.b32.xlu1 %v1558_v41, %s2737_s24  ;;  %v1586_v41 = vor.u32 %v1585_v59, %v1581_v31 }
 0x2aa   :  { %v3931_v23 = vpop.permute.xlu1 %1817  ;;  %v3933_v16 = vpop.permute.xlu0 %1707 }
 0x2ab   :  { %1693 = vrot.lane.b32.xlu0 %v1668_v19, %s2733_s14  ;;  %1721 = vrot.lane.b32.xlu1 %v3937_v0, %s2730_s22 }
 0x2ae   :  { %v3944_v53 = vpop.permute.xlu1 %1881  ;;  %v3946_v40 = vpop.permute.xlu0 %1791 }
 0x2af   :  { %1727 = vrot.lane.b32.xlu0 %v3950_v25, %s2730_s22  ;;  %1805 = vrot.lane.b32.xlu1 %v1668_v19, %s2738_s2 }
 0x2b2   :  { %v3955_v42 = vpop.permute.xlu1 %1681  ;;  %v3960_v10 = vpop.permute.xlu0 %1787 }
 0x2b3   :  { %1837 = vrot.lane.b32.xlu1 %v3950_v25, %s2735_s1  ;;  %1895 = vrot.lane.b32.xlu0 %v1668_v19, %s2736_s23 }
 0x2b6   :  { %v3963_v33 = vpop.permute.xlu1 %1677  ;;  %v3969_v50 = vpop.permute.xlu0 %1621 }
 0x2b7   :  { %1801 = vrot.lane.b32.xlu1 %v1666_v57, %s2738_s2  ;;  %1689 = vrot.lane.b32.xlu0 %v1666_v57, %s2733_s14  ;;  %v1578_v57 = vrot.slane %v1576_v34, 1 }
 0x2b9   :  { %v4015_v34 = vor.u32 %v1578_v57, %v1574_v21 }
 0x2ba   :  { %v3971_v26 = vpop.permute.xlu1 %1877  ;;  %v3987_v54 = vpop.permute.xlu0 %1849 }
 0x2bb   :  { %1833 = vrot.lane.b32.xlu1 %v3975_v58, %s2735_s1  ;;  %1723 = vrot.lane.b32.xlu0 %v3975_v58, %s2730_s22 }
 0x2be   :  { %v3983_v60 = vpop.permute.xlu1 %1755  ;;  %v1618_v46 = vpop.permute.xlu0 %1617 }
 0x2bf   :  { %1897 = vrot.lane.b32.xlu1 %v1669_v49, %s2736_s23  ;;  %1807 = vrot.lane.b32.xlu0 %v1669_v49, %s2738_s2  ;;  %v1910_v52 = vsel %vm874_vm8, %v3741_v14, %v1618_v46 }
 0x2c0   :  { %v1940_v14 = vsel %vm938_vm10, %v1910_v52, %v3924_v29 }
 0x2c2   :  { %v1752_v11 = vpop.permute.xlu1 %1751 }
 0x2c3   :  { %1695 = vrot.lane.b32.xlu1 %v1669_v49, %s2733_s14  ;;  %1803 = vrot.lane.b32.xlu0 %v1667_v27, %s2738_s2  ;;  %v1908_v49 = vsel %vm874_vm8, 0, %v3859_v38  ;;  %v1569_v38 = vshll.u32 %v3937_v0, 16 }
 0x2c5   :  { %v2648_v7 = vpop.f32.mrb[12].mxu0 }
 0x2c6   :  { %v1287_v5 = vadd.f32 %v2648_v7, %v3720_v3  ;;  %v1278_v22 = vpop.f32.mrb[13].mxu0  ;;  %v3996_v35 = vpop.permute.xlu1 %1851 }
 0x2c7   :  { %v1279_v51 = vadd.f32 %v3720_v3, %v1278_v22  ;;  %1691 = vrot.lane.b32.xlu1 %v1667_v27, %s2733_s14  ;;  %1865 = vrot.lane.b32.xlu0 %v1586_v41, %s2737_s24  ;;  %v2649_v19 = vpop.f32.mrb[14].mxu0  ;;  %v4011_v7 = vpop.permute.xlu0 %1757  ;;  %v4020_v22 = vsel %vm938_vm10, %v1908_v49, %v3870_v63 }
 0x2c8   :  { %v1307_v8 = vmax.f32 %v1287_v5, 0.0  ;;  %v1281_v47 = vpop.f32.mrb[15].mxu0  ;;  %v1968_v21 = vsel %vm1004_vm12, %v4020_v22, %v3895_v37  ;;  %v1567_v37 = vshrl.u32 %v3937_v0, 16 }
 0x2c9   :  { %v1305_v39 = vmax.f32 %v1279_v51, 0.0  ;;  %v1282_v59 = vadd.f32 %v3720_v3, %v1281_v47  ;;  %v2000_v46 = vsel %vm1068_vm14, %v1968_v21, %v1752_v11 }
 0x2ca   :  { %v2586_v20 = vpack.c.bf16 %v1307_v8, %v1307_v8  ;;  %v4013_v5 = vpop.permute.xlu1 %1623  ;;  %v2033_v29 = vsel %vm2031_vm1, %v2000_v46, %v3922_v28  ;;  %v1290_v28 = vadd.f32 %v2649_v19, %v3720_v3 }
 0x2cb   :  { %v2584_v13 = vpack.c.bf16 %v1305_v39, %v1305_v39  ;;  %1893 = vrot.lane.b32.xlu1 %v1667_v27, %s2736_s23  ;;  %1773 = vrot.lane.b32.xlu0 %v4002_v24, %s2732_s13  ;;  %v1306_v39 = vmax.f32 %v1282_v59, 0.0 }
 0x2cc   :  { %v1456_v31 = vshrl.u32 %v2586_v20, 16  ;;  %v1459_v51 = vshll.u32 %v2586_v20, 16 }
 0x2cd   :  { %v1442_v6 = vshrl.u32 %v2584_v13, 16  ;;  %v1445_v47 = vshll.u32 %v2584_v13, 16 }
 0x2ce   :  { %v1458_v27 = vrot.slane %v1456_v31, 7  ;;  %v1571_v31 = vrot.slane %v1569_v38, 1  ;;  %v1970_v38 = vsel %vm1004_vm12, %v1940_v14, %v3933_v16  ;;  %v1308_v14 = vmax.f32 %v1290_v28, 0.0 }
 0x2cf   :  { %v1444_v8 = vrot.slane %v1442_v6, 7  ;;  %1635 = vrot.lane.b32.xlu1 %v1586_v41, %s2728_s11  ;;  %1633 = vrot.lane.b32.xlu0 %v4015_v34, %s2728_s11  ;;  %v2585_v6 = vpack.c.bf16 %v1306_v39, %v1306_v39 }
 0x2d0   :  { %v1461_v57 = vor.u32 %v1459_v51, %v1458_v27  ;;  %v1572_v51 = vor.u32 %v1571_v31, %v1567_v37 }
 0x2d1   :  { %v1447_v63 = vor.u32 %v1445_v47, %v1444_v8  ;;  %v4030_v49 = vpop.permute.xlu1 %1717  ;;  %v4032_v20 = vpop.permute.xlu0 %1827  ;;  %v1449_v39 = vshrl.u32 %v2585_v6, 16 }
 0x2d2   :  { %v1499_v13 = vsel %vm3010_vm4, 0, %v1461_v57 }
 0x2d3   :  { %v1497_v59 = vsel %vm3010_vm4, 0, %v1447_v63  ;;  %1771 = vrot.lane.b32.xlu1 %v1586_v41, %s2732_s13  ;;  %1769 = vrot.lane.b32.xlu0 %v4015_v34, %s2732_s13  ;;  %v4051_v41 = vsel %vm3015_vm5, %v1499_v13, 0  ;;  %v1451_v46 = vrot.slane %v1449_v39, 7  ;;  %v1452_v13 = vshll.u32 %v2585_v6, 16 }
 0x2d4   :  { %v4058_v47 = vsel %vm3015_vm5, %v1497_v59, 0 }
 0x2d5   :  { %v1620_v11 = vpop.permute.xlu1 %1619  ;;  %v1754_v27 = vpop.permute.xlu0 %1753  ;;  %v1597_v28 = vshll.u32 %v4058_v47, 16 }
 0x2d6   :  { %v1912_v52 = vsel %vm874_vm8, %v3765_v30, %v1620_v11  ;;  %v2002_v8 = vsel %vm1068_vm14, %v1970_v38, %v1754_v27  ;;  %v1454_v11 = vor.u32 %v1452_v13, %v1451_v46  ;;  %v1611_v38 = vshll.u32 %v4051_v41, 16 }
 0x2d7   :  { %v1942_v16 = vsel %vm938_vm10, %v1912_v52, %v3963_v33  ;;  %v2035_v57 = vsel %vm2031_vm1, %v2002_v8, %v3960_v10  ;;  %1631 = vrot.lane.b32.xlu1 %v1572_v51, %s2728_s11  ;;  %1839 = vrot.lane.b32.xlu0 %v4058_v47, %s2735_s1  ;;  %v2066_v33 = vsel %vm2064_vm2, %v2033_v29, %v3931_v23  ;;  %v4079_v10 = vrot.slane %v4051_v41, 1 }
 0x2d8   :  { %v1972_v30 = vsel %vm1004_vm12, %v1942_v16, %v3889_v61  ;;  %v2068_v21 = vsel %vm2064_vm2, %v2035_v57, %v3891_v43  ;;  %v1613_v8 = vrot.slane %v1611_v38, 1 }
 0x2d9   :  { %v2004_v3 = vsel %vm1068_vm14, %v1972_v30, %v3983_v60  ;;  %v1848_v19 = vpop.permute.xlu1 %1847  ;;  %v4076_v63 = vpop.permute.xlu0 %1823  ;;  %v2100_v31 = vsel %vm2096_vm3, %v2068_v21, %v3987_v54 }
 0x2da   :  { %v2037_v61 = vsel %vm2031_vm1, %v2004_v3, %v3902_v45  ;;  %v2098_v43 = vsel %vm2096_vm3, %v2066_v33, %v1848_v19  ;;  %v2132_v60 = vsel %vm2128_vm6, %v2100_v31, %v3917_v12  ;;  %v4100_v12 = vrot.slane %v4058_v47, 1 }
 0x2db   :  { %1767 = vrot.lane.b32.xlu1 %v1572_v51, %s2732_s13  ;;  %1701 = vrot.lane.b32.xlu0 %v4079_v10, %s2733_s14  ;;  %v2130_v23 = vsel %vm2128_vm6, %v2098_v43, %v3971_v26  ;;  %v2070_v45 = vsel %vm2064_vm2, %v2037_v61, %v3915_v4  ;;  %v2587_v26 = vpack.c.bf16 %v1308_v14, %v1308_v14  ;;  %v1599_v33 = vrot.slane %v1597_v28, 1 }
 0x2dc   :  { %v2535_v54 = vcombine.low %v2130_v23, %v2132_v60  ;;  %v4104_v29 = vsel %vm2096_vm3, %v2070_v45, %v3996_v35  ;;  %v1498_v35 = vsel %vm3010_vm4, 0, %v1454_v11  ;;  %v1595_v31 = vshrl.u32 %v4058_v47, 16 }
 0x2dd   :  { %v4095_v59 = vpop.permute.xlu1 %1713  ;;  %v4097_v37 = vpop.permute.xlu0 %1687  ;;  %v1463_v27 = vshrl.u32 %v2587_v26, 16  ;;  %v4129_v39 = vsel %vm3015_vm5, %v1498_v35, 0  ;;  %v1466_v57 = vshll.u32 %v2587_v26, 16 }
 0x2de   :  { %2660 = vmatprep.mubr.msk.bf16.mxu1 %vm2243_vm7, %v2535_v54  ;;  %v1600_v43 = vor.u32 %v1599_v33, %v1595_v31  ;;  %v1604_v23 = vshll.u32 %v4129_v39, 16  ;;  %v1602_v2 = vshrl.u32 %v4129_v39, 16 }
 0x2df   :  { %1867 = vrot.lane.b32.xlu1 %v4002_v24, %s2737_s24  ;;  %1899 = vrot.lane.b32.xlu0 %v4100_v12, %s2736_s23  ;;  %v1465_v16 = vrot.slane %v1463_v27, 7 }
 0x2e0   :  { %v1606_v13 = vrot.slane %v1604_v23, 1 }
 0x2e1   :  { %v4111_v4 = vpop.permute.xlu1 %1797  ;;  %v4113_v6 = vpop.permute.xlu0 %1719  ;;  %v1468_v19 = vor.u32 %v1466_v57, %v1465_v16 }
 0x2e2   :  { %v1607_v38 = vor.u32 %v1606_v13, %v1602_v2 }
 0x2e3   :  { %1637 = vrot.lane.b32.xlu1 %v4002_v24, %s2728_s11  ;;  %1697 = vrot.lane.b32.xlu0 %v4100_v12, %s2733_s14  ;;  %v1609_v24 = vshrl.u32 %v4051_v41, 16  ;;  %v1500_v14 = vsel %vm3010_vm4, 0, %v1468_v19  ;;  %vm2449_vm4 = vcmask 60416  }
 0x2e4   :  { %v4162_v54 = vsel %vm3015_vm5, %v1500_v14, 0 }
 0x2e5   :  { %v4122_v51 = vpop.permute.xlu1 %1829  ;;  %v4124_v52 = vpop.permute.xlu0 %1887  ;;  %v4138_v3 = vor.u32 %v1613_v8, %v1609_v24  ;;  %v1747_v26 = vshll.u32 %v4162_v54, 16  ;;  %v1745_v8 = vshrl.u32 %v4162_v54, 16  ;;  %v1914_v24 = vsel %vm874_vm8, %v3730_v17, %v3969_v50 }
 0x2e6   :  { %v1944_v57 = vsel %vm938_vm10, %v1914_v24, %v3897_v48 }
 0x2e7   :  { %1733 = vrot.lane.b32.xlu1 %v4051_v41, %s2730_s22  ;;  %1731 = vrot.lane.b32.xlu0 %v4129_v39, %s2730_s22  ;;  %v1749_v27 = vrot.slane %v1747_v26, 1  ;;  %v1974_v31 = vsel %vm1004_vm12, %v1944_v57, %v3904_v15 }
 0x2e8   :  { %v2006_v17 = vsel %vm1068_vm14, %v1974_v31, %v4011_v7  ;;  %v2134_v7 = vsel %vm2128_vm6, %v4104_v29, %v3944_v53  ;;  %v1916_v53 = vsel %vm874_vm8, %v3750_v55, %v4013_v5 }
 0x2e9   :  { %v4136_v30 = vpop.permute.xlu1 %1793  ;;  %v1884_v21 = vpop.permute.xlu0 %1883  ;;  %v1750_v16 = vor.u32 %v1749_v27, %v1745_v8  ;;  %v2039_v48 = vsel %vm2031_vm1, %v2006_v17, %v3946_v40  ;;  %v1946_v27 = vsel %vm938_vm10, %v1916_v53, %v3955_v42 }
 0x2ea   :  { %v1976_v55 = vsel %vm1004_vm12, %v1946_v27, %v4095_v59 }
 0x2eb   :  { %1863 = vrot.lane.b32.xlu1 %v4015_v34, %s2737_s24  ;;  %1643 = vrot.lane.b32.xlu0 %v4138_v3, %s2728_s11  ;;  %v4157_v34 = vrot.slane %v4129_v39, 1 }
 0x2ed   :  { %v4145_v61 = vpop.permute.xlu0 %1683  ;;  %v4147_v60 = vpop.permute.xlu1 %1825 }
 0x2ef   :  { %1729 = vrot.lane.b32.xlu1 %v4058_v47, %s2730_s22  ;;  %1869 = vrot.lane.b32.xlu0 %v1600_v43, %s2737_s24 }
 0x2f1   :  { %v4154_v46 = vpop.permute.xlu0 %1715  ;;  %v4167_v45 = vpop.permute.xlu1 %1685 }
 0x2f3   :  { %1699 = vrot.lane.b32.xlu1 %v4157_v34, %s2733_s14  ;;  %1639 = vrot.lane.b32.xlu0 %v1600_v43, %s2728_s11 }
 0x2f5   :  { %v1800_v62 = vpop.permute.xlu0 %1799  ;;  %v4176_v35 = vpop.permute.xlu1 %1885 }
 0x2f7   :  { %1775 = vrot.lane.b32.xlu1 %v1600_v43, %s2732_s13  ;;  %1735 = vrot.lane.b32.xlu0 %v4162_v54, %s2730_s22  ;;  %v1784_v43 = vrot.slane %v4162_v54, 1 }
 0x2f9   :  { %v4174_v11 = vpop.permute.xlu0 %1889  ;;  %v1764_v33 = vpop.permute.xlu1 %1763 }
 0x2fb   :  { %1641 = vrot.lane.b32.xlu1 %v1607_v38, %s2728_s11  ;;  %1777 = vrot.lane.b32.xlu0 %v1607_v38, %s2732_s13 }
 0x2fd   :  { %v4181_v28 = vpop.permute.xlu0 %1795  ;;  %v1760_v14 = vpop.permute.xlu1 %1759 }
 0x2ff   :  { %1779 = vrot.lane.b32.xlu1 %v4138_v3, %s2732_s13  ;;  %1781 = vrot.lane.b32.xlu0 %v1750_v16, %s2732_s13 }
 0x301   :  { %v1630_v19 = vpop.permute.xlu0 %1629 }
 0x302   :  { %v1922_v40 = vsel %vm874_vm8, %v3801_v32, %v1630_v19 }
 0x303   :  { %1809 = vrot.lane.b32.xlu1 %v4100_v12, %s2738_s2  ;;  %1811 = vrot.lane.b32.xlu0 %v4157_v34, %s2738_s2  ;;  %v2072_v12 = vsel %vm2064_vm2, %v2039_v48, %v4076_v63  ;;  %v1860_v63 = vpop.permute.xlu1 %1859  ;;  %v1952_v29 = vsel %vm938_vm10, %v1922_v40, %v4097_v37 }
 0x304   :  { %v1982_v8 = vsel %vm1004_vm12, %v1952_v29, %v4113_v6 }
 0x305   :  { %v1858_v50 = vpop.permute.xlu0 %1857 }
 0x307   :  { %1813 = vrot.lane.b32.xlu1 %v4079_v10, %s2738_s2  ;;  %1815 = vrot.lane.b32.xlu0 %v1784_v43, %s2738_s2 }
 0x309   :  { %v1854_v23 = vpop.permute.xlu0 %1853 }
 0x30a   :  { %v2104_v15 = vsel %vm2096_vm3, %v2072_v12, %v1854_v23 }
 0x30b   :  { %v2136_v13 = vsel %vm2128_vm6, %v2104_v15, %v1884_v21  ;;  %1841 = vrot.lane.b32.xlu1 %v4129_v39, %s2735_s1  ;;  %1843 = vrot.lane.b32.xlu0 %v4051_v41, %s2735_s1 }
 0x30c   :  { %v2536_v26 = vcombine.low %v2134_v7, %v2136_v13 }
 0x30d   :  { %v1626_v2 = vpop.permute.xlu0 %1625 }
 0x30e   :  { %2661 = vmatmul.mubr.msk.bf16.vlgmr.msra.gmra.mrb[0].mxu1 %vm2243_vm7, %v2536_v26  ;;  %v1918_v5 = vsel %vm874_vm8, %v3815_v36, %v1626_v2 }
 0x30f   :  { %1845 = vrot.lane.b32.xlu1 %v4162_v54, %s2735_s1  ;;  %1871 = vrot.lane.b32.xlu0 %v1607_v38, %s2737_s24  ;;  %v2008_v54 = vsel %vm1068_vm14, %v1976_v55, %v1760_v14  ;;  %v1948_v6 = vsel %vm938_vm10, %v1918_v5, %v4145_v61 }
 0x310   :  { %v2041_v24 = vsel %vm2031_vm1, %v2008_v54, %v4136_v30  ;;  %v1978_v30 = vsel %vm1004_vm12, %v1948_v6, %v4154_v46 }
 0x311   :  { %v4227_v21 = vpop.permute.xlu1 %1725  ;;  %v1766_v32 = vpop.permute.xlu0 %1765 }
 0x312   :  { %v2014_v37 = vsel %vm1068_vm14, %v1982_v8, %v1766_v32 }
 0x313   :  { %1873 = vrot.lane.b32.xlu1 %v4138_v3, %s2737_s24  ;;  %1875 = vrot.lane.b32.xlu0 %v1750_v16, %s2737_s24  ;;  %v2047_v59 = vsel %vm2031_vm1, %v2014_v37, %v1800_v62 }
 0x314   :  { %v2080_v62 = vsel %vm2064_vm2, %v2047_v59, %v3872_v1 }
 0x315   :  { %v1628_v38 = vpop.permute.xlu1 %1627  ;;  %v4242_v42 = vpop.permute.xlu0 %1835  ;;  %v2112_v46 = vsel %vm2096_vm3, %v2080_v62, %v3883_v56 }
 0x316   :  { %v1920_v36 = vsel %vm874_vm8, %v3842_v9, %v1628_v38  ;;  %v2144_v12 = vsel %vm2128_vm6, %v2112_v46, %v3881_v44 }
 0x317   :  { %v1950_v3 = vsel %vm938_vm10, %v1920_v36, %v4167_v45  ;;  %1901 = vrot.lane.b32.xlu1 %v4157_v34, %s2736_s23  ;;  %1903 = vrot.lane.b32.xlu0 %v4079_v10, %s2736_s23  ;;  %v2074_v34 = vsel %vm2064_vm2, %v2041_v24, %v4147_v60 }
 0x318   :  { %v1980_v61 = vsel %vm1004_vm12, %v1950_v3, %v4030_v49 }
 0x319   :  { %v2012_v9 = vsel %vm1068_vm14, %v1980_v61, %v1764_v33  ;;  %v1856_v16 = vpop.permute.xlu1 %1855  ;;  %v1762_v57 = vpop.permute.xlu0 %1761 }
 0x31a   :  { %v2045_v45 = vsel %vm2031_vm1, %v2012_v9, %v4111_v4  ;;  %v2010_v10 = vsel %vm1068_vm14, %v1978_v30, %v1762_v57  ;;  %v2106_v49 = vsel %vm2096_vm3, %v2074_v34, %v1856_v16 }
 0x31b   :  { %v2043_v19 = vsel %vm2031_vm1, %v2010_v10, %v4181_v28  ;;  %1905 = vrot.lane.b32.xlu1 %v1784_v43, %s2736_s23  ;;  %v2078_v33 = vsel %vm2064_vm2, %v2045_v45, %v4122_v51  ;;  %v2138_v43 = vsel %vm2128_vm6, %v2106_v49, %v4176_v35 }
 0x31c   :  { %v2076_v4 = vsel %vm2064_vm2, %v2043_v19, %v4032_v20  ;;  %v2110_v60 = vsel %vm2096_vm3, %v2078_v33, %v1860_v63 }
 0x31d   :  { %v2108_v31 = vsel %vm2096_vm3, %v2076_v4, %v1858_v50  ;;  %v1722_v17 = vpop.permute.xlu1 %1721  ;;  %v1694_v14 = vpop.permute.xlu0 %1693  ;;  %v2142_v28 = vsel %vm2128_vm6, %v2110_v60, %v4174_v11 }
 0x31e   :  { %v2140_v51 = vsel %vm2128_vm6, %v2108_v31, %v4124_v52  ;;  %v2538_v20 = vcombine.low %v2142_v28, %v2144_v12  ;;  %v1984_v34 = vsel %vm1004_vm12, %v4020_v22, %v1722_v17 }
 0x31f   :  { %v2537_v48 = vcombine.low %v2138_v43, %v2140_v51 }
 0x321   :  { %v1806_v23 = vpop.permute.xlu1 %1805  ;;  %2664 = vmatprep.mubr.msk.bf16.mxu1 %vm2243_vm7, %v2537_v48  ;;  %v1728_v50 = vpop.permute.xlu0 %1727 }
 0x322   :  { %2665 = vmatmul.mubr.msk.bf16.gmra.mrb[4].mxu1 %vm2243_vm7, %v2538_v20 }
 0x325   :  { %v1838_v15 = vpop.permute.xlu1 %1837  ;;  %v1896_v7 = vpop.permute.xlu0 %1895 }
 0x329   :  { %v1802_v11 = vpop.permute.xlu1 %1801  ;;  %v1690_v13 = vpop.permute.xlu0 %1689 }
 0x32d   :  { %v1834_v40 = vpop.permute.xlu1 %1833  ;;  %v1724_v35 = vpop.permute.xlu0 %1723 }
 0x331   :  { %v1898_v26 = vpop.permute.xlu1 %1897  ;;  %v1808_v63 = vpop.permute.xlu0 %1807 }
 0x335   :  { %v4291_v52 = vpop.permute.xlu1 %1695  ;;  %v1804_v2 = vpop.permute.xlu0 %1803 }
 0x339   :  { %v1692_v53 = vpop.permute.xlu1 %1691  ;;  %v1866_v29 = vpop.permute.xlu0 %1865 }
 0x33d   :  { %v1894_v32 = vpop.permute.xlu1 %1893  ;;  %v1774_v27 = vpop.permute.xlu0 %1773 }
 0x341   :  { %v1636_v8 = vpop.permute.xlu1 %1635  ;;  %v1634_v55 = vpop.permute.xlu0 %1633 }
 0x342   :  { %v1926_v3 = vsel %vm874_vm8, %v3975_v58, %v1634_v55  ;;  %v1928_v57 = vsel %vm874_vm8, %v3908_v18, %v1636_v8 }
 0x343   :  { %v1956_v16 = vsel %vm938_vm10, %v1926_v3, %v1692_v53  ;;  %v1958_v49 = vsel %vm938_vm10, %v1928_v57, %v1694_v14 }
 0x344   :  { %v1988_v10 = vsel %vm1004_vm12, %v1956_v16, %v4227_v21  ;;  %v1990_v60 = vsel %vm1004_vm12, %v1958_v49, %v1728_v50 }
 0x345   :  { %v1772_v5 = vpop.permute.xlu1 %1771  ;;  %v1770_v37 = vpop.permute.xlu0 %1769  ;;  %v2022_v17 = vsel %vm1068_vm14, %v1990_v60, %v1774_v27 }
 0x346   :  { %v2020_v33 = vsel %vm1068_vm14, %v1988_v10, %v1772_v5  ;;  %v2055_v20 = vsel %vm2031_vm1, %v2022_v17, %v1808_v63 }
 0x347   :  { %v2053_v31 = vsel %vm2031_vm1, %v2020_v33, %v1806_v23 }
 0x348   :  { %v2086_v48 = vsel %vm2064_vm2, %v2053_v31, %v1838_v15 }
 0x349   :  { %v1632_v54 = vpop.permute.xlu1 %1631  ;;  %v1840_v38 = vpop.permute.xlu0 %1839 }
 0x34a   :  { %v1924_v6 = vsel %vm874_vm8, %v3937_v0, %v1632_v54 }
 0x34b   :  { %v1954_v59 = vsel %vm938_vm10, %v1924_v6, %v1690_v13 }
 0x34c   :  { %v1986_v61 = vsel %vm1004_vm12, %v1954_v59, %v1724_v35 }
 0x34d   :  { %v1768_v36 = vpop.permute.xlu1 %1767  ;;  %v4296_v24 = vpop.permute.xlu0 %1701  ;;  %v2018_v30 = vsel %vm1068_vm14, %v1986_v61, %v1770_v37 }
 0x34e   :  { %v2051_v58 = vsel %vm2031_vm1, %v2018_v30, %v1804_v2  ;;  %v2016_v19 = vsel %vm1068_vm14, %v1984_v34, %v1768_v36 }
 0x34f   :  { %v2084_v18 = vsel %vm2064_vm2, %v2051_v58, %v4242_v42  ;;  %v2049_v22 = vsel %vm2031_vm1, %v2016_v19, %v1802_v11  ;;  %v2088_v11 = vsel %vm2064_vm2, %v2055_v20, %v1840_v38 }
 0x350   :  { %v2116_v21 = vsel %vm2096_vm3, %v2084_v18, %v1866_v29  ;;  %v2082_v14 = vsel %vm2064_vm2, %v2049_v22, %v1834_v40 }
 0x351   :  { %v1868_v62 = vpop.permute.xlu1 %1867  ;;  %v1900_v9 = vpop.permute.xlu0 %1899  ;;  %v2148_v12 = vsel %vm2128_vm6, %v2116_v21, %v1896_v7 }
 0x352   :  { %v2118_v23 = vsel %vm2096_vm3, %v2086_v48, %v1868_v62 }
 0x353   :  { %v2150_v2 = vsel %vm2128_vm6, %v2118_v23, %v1898_v26 }
 0x355   :  { %v1638_v0 = vpop.permute.xlu1 %1637  ;;  %v1698_v45 = vpop.permute.xlu0 %1697 }
 0x356   :  { %v1930_v61 = vsel %vm874_vm8, %v3950_v25, %v1638_v0 }
 0x359   :  { %v1734_v46 = vpop.permute.xlu1 %1733  ;;  %v1732_v4 = vpop.permute.xlu0 %1731 }
 0x35d   :  { %v1864_v28 = vpop.permute.xlu1 %1863  ;;  %v1644_v43 = vpop.permute.xlu0 %1643 }
 0x35e   :  { %v2114_v51 = vsel %vm2096_vm3, %v2082_v14, %v1864_v28  ;;  %v1936_v26 = vsel %vm874_vm8, %v4051_v41, %v1644_v43  ;;  %v1960_v41 = vsel %vm938_vm10, %v1930_v61, %v4291_v52 }
 0x35f   :  { %v2146_v42 = vsel %vm2128_vm6, %v2114_v51, %v1894_v32  ;;  %v1966_v57 = vsel %vm938_vm10, %v1936_v26, %v4296_v24 }
 0x360   :  { %v2539_v50 = vcombine.low %v2146_v42, %v2148_v12 }
 0x361   :  { %v1730_v13 = vpop.permute.xlu1 %1729  ;;  %v1870_v35 = vpop.permute.xlu0 %1869 }
 0x362   :  { %v2120_v40 = vsel %vm2096_vm3, %v2088_v11, %v1870_v35  ;;  %2668 = vmatprep.mubr.msk.bf16.mxu1 %vm2243_vm7, %v2539_v50  ;;  %v1992_v25 = vsel %vm1004_vm12, %v1960_v41, %v1730_v13  ;;  %v4379_v11 = vld [vmem:[%s4432_s4] ss:$0 sm:$0xff]  ;;  %s2739_s4 = smov [#allocation2]  }
 0x363   :  { %v2152_v15 = vsel %vm2128_vm6, %v2120_v40, %v1900_v9  ;;  %s2471_s22 = sshll.u32 %s2739_s4, 4  ;;  %s2472_s22 = int_to_ptr.vmem [resolvable:$true] %s2471_s22 }
 0x364   :  { %v2540_v53 = vcombine.low %v2150_v2, %v2152_v15  ;;  %s2701_s13 = scalar_lea.vmem %s2472_s22, 1024  ;;  %p2706_p1 = scmp.lt.s32.totalorder %s2472_s22, %s2472_s22 }
 0x365   :  { %v1700_v29 = vpop.permute.xlu1 %1699  ;;  %v1640_v7 = vpop.permute.xlu0 %1639  ;;  %p2702_p0 = scmp.ne.s32.totalorder %s2472_s22, %s2701_s13  ;;  %p2707_p2 = scmp.lt.s32.totalorder %s2701_s13, %s2701_s13 }
 0x366   :  { %2669 = vmatmul.mubr.msk.bf16.gmra.mrb[8].mxu1 %vm2243_vm7, %v2540_v53  ;;  %v1932_v3 = vsel %vm874_vm8, %v4058_v47, %v1640_v7 }
 0x367   :  { %v1962_v30 = vsel %vm938_vm10, %v1932_v3, %v1698_v45  ;;  %p2708_p3 = por %p2707_p2, %p2706_p1 }
 0x369   :  { %v1776_v63 = vpop.permute.xlu1 %1775  ;;  %v1736_v32 = vpop.permute.xlu0 %1735  ;;  %p2709_p4 = pnand %p2708_p3, %p2702_p0 }
 0x36a   :  { %v1998_v34 = vsel %vm1004_vm12, %v1966_v57, %v1736_v32  ;;  %v2024_v49 = vsel %vm1068_vm14, %v1992_v25, %v1776_v63 }
 0x36d   :  { %v1642_v27 = vpop.permute.xlu1 %1641  ;;  %v1778_v8 = vpop.permute.xlu0 %1777 }
 0x36e   :  { %v1934_v62 = vsel %vm874_vm8, %v4129_v39, %v1642_v27  ;;  %v1994_v39 = vsel %vm1004_vm12, %v1962_v30, %v1732_v4 }
 0x36f   :  { %v1964_v47 = vsel %vm938_vm10, %v1934_v62, %v1700_v29  ;;  %v2026_v24 = vsel %vm1068_vm14, %v1994_v39, %v1778_v8 }
 0x370   :  { %v1996_v19 = vsel %vm1004_vm12, %v1964_v47, %v1734_v46 }
 0x371   :  { %v1780_v55 = vpop.permute.xlu1 %1779  ;;  %v1782_v5 = vpop.permute.xlu0 %1781 }
 0x372   :  { %v2030_v10 = vsel %vm1068_vm14, %v1998_v34, %v1782_v5  ;;  %v2028_v14 = vsel %vm1068_vm14, %v1996_v19, %v1780_v55 }
 0x375   :  { %v1810_v37 = vpop.permute.xlu1 %1809  ;;  %v1812_v54 = vpop.permute.xlu0 %1811 }
 0x376   :  { %v2057_v52 = vsel %vm2031_vm1, %v2024_v49, %v1810_v37  ;;  %v2059_v33 = vsel %vm2031_vm1, %v2026_v24, %v1812_v54 }
 0x379   :  { %v1814_v38 = vpop.permute.xlu1 %1813  ;;  %v1816_v6 = vpop.permute.xlu0 %1815 }
 0x37a   :  { %v2063_v0 = vsel %vm2031_vm1, %v2030_v10, %v1816_v6  ;;  %v2061_v43 = vsel %vm2031_vm1, %v2028_v14, %v1814_v38 }
 0x37b   :  { %v2095_v18 = vsel %vm2064_vm2, %v2063_v0, %v3872_v1 }
 0x37c   :  { %v2127_v1 = vsel %vm2096_vm3, %v2095_v18, %v3883_v56 }
 0x37d   :  { %v1842_v59 = vpop.permute.xlu1 %1841  ;;  %v1844_v36 = vpop.permute.xlu0 %1843  ;;  %v2159_v23 = vsel %vm2128_vm6, %v2127_v1, %v3881_v44 }
 0x37e   :  { %v2090_v60 = vsel %vm2064_vm2, %v2057_v52, %v1842_v59  ;;  %v2092_v4 = vsel %vm2064_vm2, %v2059_v33, %v1844_v36 }
 0x381   :  { %v1846_v9 = vpop.permute.xlu1 %1845  ;;  %v1872_v16 = vpop.permute.xlu0 %1871 }
 0x382   :  { %v2122_v22 = vsel %vm2096_vm3, %v2090_v60, %v1872_v16  ;;  %v2094_v48 = vsel %vm2064_vm2, %v2061_v43, %v1846_v9 }
 0x385   :  { %v1874_v58 = vpop.permute.xlu1 %1873  ;;  %v1876_v45 = vpop.permute.xlu0 %1875 }
 0x386   :  { %v2124_v31 = vsel %vm2096_vm3, %v2092_v4, %v1874_v58  ;;  %v2126_v42 = vsel %vm2096_vm3, %v2094_v48, %v1876_v45 }
 0x389   :  { %v1902_v21 = vpop.permute.xlu1 %1901  ;;  %v1904_v17 = vpop.permute.xlu0 %1903 }
 0x38a   :  { %v2154_v46 = vsel %vm2128_vm6, %v2122_v22, %v1902_v21  ;;  %v2156_v28 = vsel %vm2128_vm6, %v2124_v31, %v1904_v17 }
 0x38b   :  { %v2541_v51 = vcombine.low %v2154_v46, %v2156_v28 }
 0x38d   :  { %v1906_v12 = vpop.permute.xlu1 %1905  ;;  %2672 = vmatprep.mubr.msk.bf16.mxu1 %vm2243_vm7, %v2541_v51 }
 0x38e   :  { %v2158_v20 = vsel %vm2128_vm6, %v2126_v42, %v1906_v12 }
 0x38f   :  { %v2542_v50 = vcombine.low %v2158_v20, %v2159_v23 }
 0x391   :  { %2673 = vmatmul.mubr.msk.bf16.gmra.mrb[12].mxu1 %vm2243_vm7, %v2542_v50 }
 0x3e1   :  { %v2662_v56 = vpop.f32.mrb[0].mxu1 }
 0x3e2   :  { %v2315_v13 = vadd.f32 %v2662_v56, %v4379_v11  ;;  %v2306_v35 = vpop.f32.mrb[1].mxu1 }
 0x3e3   :  { %v2307_v40 = vadd.f32 %v4379_v11, %v2306_v35  ;;  %v2663_v2 = vpop.f32.mrb[2].mxu1 }
 0x3e4   :  { %v2371_v15 = vmax.f32 %v2315_v13, 0.0  ;;  %v2318_v53 = vadd.f32 %v2663_v2, %v4379_v11  ;;  %v2309_v29 = vpop.f32.mrb[3].mxu1 }
 0x3e5   :  { %v2369_v44 = vmax.f32 %v2307_v40, 0.0  ;;  %v2310_v7 = vadd.f32 %v4379_v11, %v2309_v29 }
 0x3e6   :  { %v2590_v63 = vpack.c.bf16 %v2371_v15, %v2371_v15  ;;  %v2372_v32 = vmax.f32 %v2318_v53, 0.0 }
 0x3e7   :  { %v2588_v27 = vpack.c.bf16 %v2369_v44, %v2369_v44  ;;  %v2370_v8 = vmax.f32 %v2310_v7, 0.0 }
 0x3e8   :  { %2452 = vst.msk [vmem:[#allocation2 + $0x8] sm:$0xf] %vm2449_vm4, %v2590_v63  ;;  %v2591_v55 = vpack.c.bf16 %v2372_v32, %v2372_v32 }
 0x3e9   :  { %2450 = vst.msk [vmem:[#allocation2] sm:$0xf] %vm2449_vm4, %v2588_v27  ;;  %v2589_v5 = vpack.c.bf16 %v2370_v8, %v2370_v8 }
 0x3ea   :  { %2453 = vst.msk [vmem:[#allocation2 + $0xc] sm:$0xf] %vm2449_vm4, %v2591_v55 }
 0x3eb   :  { %2451 = vst.msk [vmem:[#allocation2 + $0x4] sm:$0xf] %vm2449_vm4, %v2589_v5 }
 0x3f5   :  { %v2666_v37 = vpop.f32.mrb[4].mxu1 }
 0x3f6   :  { %v2331_v54 = vadd.f32 %v2666_v37, %v4379_v11  ;;  %v2322_v38 = vpop.f32.mrb[5].mxu1 }
 0x3f7   :  { %v2323_v6 = vadd.f32 %v4379_v11, %v2322_v38  ;;  %v2667_v59 = vpop.f32.mrb[6].mxu1 }
 0x3f8   :  { %v2375_v36 = vmax.f32 %v2331_v54, 0.0  ;;  %v2334_v26 = vadd.f32 %v2667_v59, %v4379_v11  ;;  %v2325_v3 = vpop.f32.mrb[7].mxu1 }
 0x3f9   :  { %v2373_v61 = vmax.f32 %v2323_v6, 0.0  ;;  %v2326_v62 = vadd.f32 %v4379_v11, %v2325_v3 }
 0x3fa   :  { %v2594_v9 = vpack.c.bf16 %v2375_v36, %v2375_v36  ;;  %v2376_v16 = vmax.f32 %v2334_v26, 0.0 }
 0x3fb   :  { %v2592_v30 = vpack.c.bf16 %v2373_v61, %v2373_v61  ;;  %v2374_v57 = vmax.f32 %v2326_v62, 0.0 }
 0x3fc   :  { %2456 = vst.msk [vmem:[#allocation2 + $0x18] sm:$0xf] %vm2449_vm4, %v2594_v9  ;;  %v2595_v34 = vpack.c.bf16 %v2376_v16, %v2376_v16 }
 0x3fd   :  { %2454 = vst.msk [vmem:[#allocation2 + $0x10] sm:$0xf] %vm2449_vm4, %v2592_v30  ;;  %v2593_v41 = vpack.c.bf16 %v2374_v57, %v2374_v57 }
 0x3fe   :  { %2457 = vst.msk [vmem:[#allocation2 + $0x1c] sm:$0xf] %vm2449_vm4, %v2595_v34 }
 0x3ff   :  { %2455 = vst.msk [vmem:[#allocation2 + $0x14] sm:$0xf] %vm2449_vm4, %v2593_v41 }
 0x439   :  { %v2670_v47 = vpop.f32.mrb[8].mxu1 }
 0x43a   :  { %v2347_v10 = vadd.f32 %v2670_v47, %v4379_v11  ;;  %v2338_v25 = vpop.f32.mrb[9].mxu1 }
 0x43b   :  { %v2339_v39 = vadd.f32 %v4379_v11, %v2338_v25  ;;  %v2671_v0 = vpop.f32.mrb[10].mxu1 }
 0x43c   :  { %v2379_v58 = vmax.f32 %v2347_v10, 0.0  ;;  %v2350_v45 = vadd.f32 %v2671_v0, %v4379_v11  ;;  %v2341_v49 = vpop.f32.mrb[11].mxu1 }
 0x43d   :  { %v2377_v24 = vmax.f32 %v2339_v39, 0.0  ;;  %v2342_v19 = vadd.f32 %v4379_v11, %v2341_v49 }
 0x43e   :  { %v2598_v52 = vpack.c.bf16 %v2379_v58, %v2379_v58  ;;  %v2380_v33 = vmax.f32 %v2350_v45, 0.0 }
 0x43f   :  { %v2596_v18 = vpack.c.bf16 %v2377_v24, %v2377_v24  ;;  %v2378_v60 = vmax.f32 %v2342_v19, 0.0 }
 0x440   :  { %2460 = vst.msk [vmem:[#allocation2 + $0x28] sm:$0xf] %vm2449_vm4, %v2598_v52  ;;  %v2599_v4 = vpack.c.bf16 %v2380_v33, %v2380_v33 }
 0x441   :  { %2458 = vst.msk [vmem:[#allocation2 + $0x20] sm:$0xf] %vm2449_vm4, %v2596_v18  ;;  %v2597_v22 = vpack.c.bf16 %v2378_v60, %v2378_v60 }
 0x442   :  { %2461 = vst.msk [vmem:[#allocation2 + $0x2c] sm:$0xf] %vm2449_vm4, %v2599_v4 }
 0x443   :  { %2459 = vst.msk [vmem:[#allocation2 + $0x24] sm:$0xf] %vm2449_vm4, %v2597_v22 }
 0x464   :  { %v2674_v31 = vpop.f32.mrb[12].mxu1 }
 0x465   :  { %v2363_v21 = vadd.f32 %v2674_v31, %v4379_v11  ;;  %v2354_v17 = vpop.f32.mrb[13].mxu1 }
 0x466   :  { %v2355_v14 = vadd.f32 %v4379_v11, %v2354_v17  ;;  %v2675_v46 = vpop.f32.mrb[14].mxu1 }
 0x467   :  { %v2383_v28 = vmax.f32 %v2363_v21, 0.0  ;;  %v2366_v43 = vadd.f32 %v2675_v46, %v4379_v11  ;;  %v2357_v51 = vpop.f32.mrb[15].mxu1 }
 0x468   :  { %v2381_v1 = vmax.f32 %v2355_v14, 0.0  ;;  %v2358_v48 = vadd.f32 %v4379_v11, %v2357_v51 }
 0x469   :  { %v2602_v42 = vpack.c.bf16 %v2383_v28, %v2383_v28  ;;  %v2384_v12 = vmax.f32 %v2366_v43, 0.0 }
 0x46a   :  { %v2600_v20 = vpack.c.bf16 %v2381_v1, %v2381_v1  ;;  %v2382_v23 = vmax.f32 %v2358_v48, 0.0 }
 0x46b   :  { %2464 = vst.msk [vmem:[#allocation2 + $0x38] sm:$0xf] %vm2449_vm4, %v2602_v42  ;;  %v2603_v50 = vpack.c.bf16 %v2384_v12, %v2384_v12 }
 0x46c   :  { %2462 = vst.msk [vmem:[#allocation2 + $0x30] sm:$0xf] %vm2449_vm4, %v2600_v20  ;;  %v2601_v56 = vpack.c.bf16 %v2382_v23, %v2382_v23 }
 0x46d   :  { %2465 = vst.msk [vmem:[#allocation2 + $0x3c] sm:$0xf] %vm2449_vm4, %v2603_v50 }
 0x46e   :  { %2463 = vst.msk [vmem:[#allocation2 + $0x34] sm:$0xf] %vm2449_vm4, %v2601_v56 }
 0x46f   :  { %2712 = shalt.err (!%p2709_p4)
}
 0x470   :  { %s2713_s16 = scalar_lea.hbm %s4433_s5, 1024 }
 0x471   :  { %p2714_p5 = scmp.ne.s32.totalorder %s4433_s5, %s2713_s16  ;;  %p2717_p6 = scmp.lt.u32.totalorder %s2713_s16, %s4433_s5 }
 0x473   :  { %p2719_p7 = pnand %p2717_p6, %p2714_p5 }
 0x475   :  { %2722 = shalt.err (!%p2719_p7)
}
 0x476   :  { %2477 = dma.vmem_to_hbm [thread:$0]  %s2472_s22, 1024, %s4433_s5, [#allocation3], %s2736_s23, %s2736_s23, %s2727_s10  }
 0x477   :  { %2723 = dma.done.wait [#allocation3], 1024  }
 0x478   :  { %2724 = vsyncadd [#allocation3], 4294966272 }
 0x479   :  { %2481 = vsyncpa [#allocation3], 1 }

</bundles_post_ra>
